<compile_context>
chip_gen: v5e
topology: v5e:2x2
jax: 0.10.0
libtpu: 0.0.40
codegen_flags: <defaults>
</compile_context>

<pallas_src>
import functools
import math

import jax
import jax.numpy as jnp
from jax.experimental import pallas as pl
from jax.experimental.pallas import tpu as pltpu


def _round_up(n, m):
    return ((n + m - 1) // m) * m


# -----------------------------------------------------------------------------
# Kernel: fused 2-layer LSTM + linear head over a chunk of timesteps.
# -----------------------------------------------------------------------------
def _fused_lstm_rollout_kernel(hidden_size, batch, steps_per_chunk,
                               x_ref, s0_ref,
                               wih1_ref, whh1_ref, wih2_ref, whh2_ref,
                               wl_ref, b_ref,
                               y_ref, s_ref):
    H = hidden_size
    B = batch
    Tc = steps_per_chunk
    chunk = pl.program_id(0)

    # Seed the resident state block (h1|c1|h2|c2 packed along lanes) once.
    @pl.when(chunk == 0)
    def _():
        s_ref[...] = s0_ref[...]

    # Hoist loop-invariant weight / bias loads out of the time loop.
    wih1 = wih1_ref[...]
    whh1 = whh1_ref[...]
    wih2 = wih2_ref[...]
    whh2 = whh2_ref[...]
    wl = wl_ref[...]
    out_pad = wl.shape[1]
    b1 = b_ref[0:1, 0:4 * H]
    b2 = b_ref[1:2, 0:4 * H]
    bl = b_ref[2:3, 0:out_pad]

    # Read the carried state once per chunk.
    s = s_ref[...]
    h1 = s[:, 0 * H:1 * H]
    c1 = s[:, 1 * H:2 * H]
    h2 = s[:, 2 * H:3 * H]
    c2 = s[:, 3 * H:4 * H]

    def cell(x, h, c, wih, whh, b):
        # Two small MXU matmuls instead of a lane-concat + one matmul.
        gates = (jnp.dot(x, wih, preferred_element_type=jnp.float32)
                 + jnp.dot(h, whh, preferred_element_type=jnp.float32) + b)
        sg = jax.nn.sigmoid(gates)              # one EUP pass over full slab
        i = sg[:, 0 * H:1 * H]
        f = sg[:, 1 * H:2 * H]
        o = sg[:, 3 * H:4 * H]
        g = jnp.tanh(gates[:, 2 * H:3 * H])     # tanh only on the g lanes
        c_new = f * c + i * g
        h_new = o * jnp.tanh(c_new)
        return h_new, c_new

    # Static (fully unrolled) time loop within the chunk.
    for t in range(Tc):
        x = x_ref[t * B:(t + 1) * B, :]
        h1, c1 = cell(x, h1, c1, wih1, whh1, b1)
        h2, c2 = cell(h1, h2, c2, wih2, whh2, b2)
        y = jnp.dot(h2, wl, preferred_element_type=jnp.float32) + bl
        y_ref[t * B:(t + 1) * B, :] = y.astype(y_ref.dtype)

    # Carry the new state in the resident output block (one HBM writeback at end).
    s_ref[:, 0 * H:1 * H] = h1
    s_ref[:, 1 * H:2 * H] = c1
    s_ref[:, 2 * H:3 * H] = h2
    s_ref[:, 3 * H:4 * H] = c2


# -----------------------------------------------------------------------------
# Wrappers
# -----------------------------------------------------------------------------
def pack_state(h1, c1, h2, c2):
    return jnp.concatenate([h1, c1, h2, c2], axis=1)


def unpack_state(s, H):
    return (s[:, 0:H], s[:, H:2 * H], s[:, 2 * H:3 * H], s[:, 3 * H:4 * H])


def fan_rollforward(x_seq, state_packed, packed_params, *, hidden_size,
                    time_chunk=None):
    """Run forward() over a whole sequence in one pallas_call.

    x_seq: [T, B, input_size]; state_packed: [B, 4H] (h1|c1|h2|c2).
    Returns (y_padded [T, B, out_pad], new_state_packed [B, 4H]).
    `time_chunk` (must divide T, and time_chunk*B % 8 == 0 unless == T)
    bounds the streamed x/y block for long rollouts (v7x VMEM).
    """
    T, B, in_size = x_seq.shape
    H = hidden_size
    wih1t, whh1t, wih2t, whh2t, WLp, Bp = packed_params
    out_pad = WLp.shape[1]

    Tc = T if time_chunk is None else time_chunk
    assert T % Tc == 0
    num_chunks = T // Tc
    assert num_chunks == 1 or (Tc * B) % 8 == 0, \
        "chunked x/y blocks must be 8-row aligned"

    x_flat = x_seq.reshape(T * B, in_size)

    y_flat, s_new = pl.pallas_call(
        functools.partial(_fused_lstm_rollout_kernel, H, B, Tc),
        grid=(num_chunks,),
        in_specs=[
            pl.BlockSpec((Tc * B, in_size), lambda c: (c, 0)),       # x chunk
            pl.BlockSpec((B, 4 * H), lambda c: (0, 0)),              # state0
            pl.BlockSpec((in_size, 4 * H), lambda c: (0, 0)),        # W_ih1^T
            pl.BlockSpec((H, 4 * H), lambda c: (0, 0)),              # W_hh1^T
            pl.BlockSpec((H, 4 * H), lambda c: (0, 0)),              # W_ih2^T
            pl.BlockSpec((H, 4 * H), lambda c: (0, 0)),              # W_hh2^T
            pl.BlockSpec((H, out_pad), lambda c: (0, 0)),            # W_lin^T (padded)
            pl.BlockSpec(Bp.shape, lambda c: (0, 0)),                # biases
        ],
        out_specs=(
            pl.BlockSpec((Tc * B, out_pad), lambda c: (c, 0)),       # y chunk
            pl.BlockSpec((B, 4 * H), lambda c: (0, 0)),              # carried state
        ),
        out_shape=(
            jax.ShapeDtypeStruct((T * B, out_pad), jnp.float32),
            jax.ShapeDtypeStruct((B, 4 * H), jnp.float32),
        ),
        input_output_aliases={1: 1},   # state in -> state out (in-place update)
        compiler_params=pltpu.CompilerParams(
            dimension_semantics=("arbitrary",)),   # recurrence: sequential axis
    )(x_flat, state_packed, wih1t, whh1t, wih2t, whh2t, WLp, Bp)

    return y_flat.reshape(T, B, out_pad), s_new


def fan_forward(x, state, packed_params, *, hidden_size, output_size):
    """Single forward step (matches module.forward semantics)."""
    sp = pack_state(*state)
    y_pad, s_new = fan_rollforward(x[None], sp, packed_params,
                                   hidden_size=hidden_size)
    y = y_pad[0, :, :output_size]
    return y, unpack_state(s_new, hidden_size)


# -----------------------------------------------------------------------------
# Parameter init (torch layout) and packing for the kernel
# -----------------------------------------------------------------------------
def _init_torch_params(key, input_size, hidden_size, output_size):
    """Mimics torch's uniform(-1/sqrt(H), 1/sqrt(H)) init, torch weight layout."""
    k = 1.0 / math.sqrt(hidden_size)
    keys = jax.random.split(key, 10)
    u = lambda kk, shape: jax.random.uniform(kk, shape, jnp.float32, -k, k)
    return dict(
        wih1=u(keys[0], (4 * hidden_size, input_size)),
        whh1=u(keys[1], (4 * hidden_size, hidden_size)),
        bih1=u(keys[2], (4 * hidden_size,)),
        bhh1=u(keys[3], (4 * hidden_size,)),
        wih2=u(keys[4], (4 * hidden_size, hidden_size)),
        whh2=u(keys[5], (4 * hidden_size, hidden_size)),
        bih2=u(keys[6], (4 * hidden_size,)),
        bhh2=u(keys[7], (4 * hidden_size,)),
        wl=u(keys[8], (output_size, hidden_size)),
        bl=u(keys[9], (output_size,)),
    )


def _pack_params(tp, input_size, hidden_size, output_size):
    H = hidden_size
    out_pad = max(128, _round_up(output_size, 128))
    WLp = jnp.zeros((H, out_pad), jnp.float32).at[:, :output_size].set(tp["wl"].T)
    bias_w = max(4 * H, out_pad)
    Bp = jnp.zeros((3, bias_w), jnp.float32)
    Bp = Bp.at[0, :4 * H].set(tp["bih1"] + tp["bhh1"])
    Bp = Bp.at[1, :4 * H].set(tp["bih2"] + tp["bhh2"])
    Bp = Bp.at[2, :output_size].set(tp["bl"])
    # Transposed halves kept separate (no concat inside the kernel).
    return (tp["wih1"].T, tp["whh1"].T, tp["wih2"].T, tp["whh2"].T, WLp, Bp)


# -----------------------------------------------------------------------------
# Pure-JAX reference (uses the un-packed torch-layout weights)
# -----------------------------------------------------------------------------
def _reference_step(x, state, tp, H):
    h1, c1, h2, c2 = state

    def cell(xv, h, c, wih, whh, bih, bhh):
        gates = xv @ wih.T + h @ whh.T + bih + bhh
        i = jax.nn.sigmoid(gates[:, :H])
        f = jax.nn.sigmoid(gates[:, H:2 * H])
        g = jnp.tanh(gates[:, 2 * H:3 * H])
        o = jax.nn.sigmoid(gates[:, 3 * H:])
        c_new = f * c + i * g
        return o * jnp.tanh(c_new), c_new

    h1n, c1n = cell(x, h1, c1, tp["wih1"], tp["whh1"], tp["bih1"], tp["bhh1"])
    h2n, c2n = cell(h1n, h2, c2, tp["wih2"], tp["whh2"], tp["bih2"], tp["bhh2"])
    y = h2n @ tp["wl"].T + tp["bl"]
    return y, (h1n, c1n, h2n, c2n)


def _reference_rollout(x_seq, state0, tp, H):
    state = state0
    ys = []
    for t in range(x_seq.shape[0]):
        y, state = _reference_step(x_seq[t], state, tp, H)
        ys.append(y)
    return jnp.stack(ys, axis=0), state


# -----------------------------------------------------------------------------
if __name__ == "__main__":
    INPUT_SIZE = 16
    HIDDEN_SIZE = 32
    OUTPUT_SIZE = 8
    BATCH = 1          # matches the module's hard-coded batch_size = 1
    STEPS = 8          # fused rollout length (single chunk)

    key = jax.random.PRNGKey(0)
    kx, kx2, kp = jax.random.split(key, 3)

    tp = _init_torch_params(kp, INPUT_SIZE, HIDDEN_SIZE, OUTPUT_SIZE)
    packed = _pack_params(tp, INPUT_SIZE, HIDDEN_SIZE, OUTPUT_SIZE)

    x_seq = jax.random.normal(kx, (STEPS, BATCH, INPUT_SIZE), jnp.float32)
    zeros = jnp.zeros((BATCH, HIDDEN_SIZE), jnp.float32)
    state0 = (zeros, zeros, zeros, zeros)

    # --- fused rollout: single pallas_call, single chunk, weights resident ---
    y_pad, s_new = fan_rollforward(x_seq, pack_state(*state0), packed,
                                   hidden_size=HIDDEN_SIZE)
    y_seq = jax.block_until_ready(y_pad)[:, :, :OUTPUT_SIZE]
    s_new = jax.block_until_ready(s_new)

    y_ref_seq, state_ref = _reference_rollout(x_seq, state0, tp, HIDDEN_SIZE)
    assert jnp.allclose(y_seq, y_ref_seq, atol=1e-5, rtol=1e-5)
    assert jnp.allclose(s_new, pack_state(*state_ref), atol=1e-5, rtol=1e-5)

    # --- chunked rollout (v7x-style VMEM bounding): 16 steps, 2 chunks -------
    STEPS2 = 16
    x_seq2 = jax.random.normal(kx2, (STEPS2, BATCH, INPUT_SIZE), jnp.float32)
    y_pad2, s_new2 = fan_rollforward(x_seq2, pack_state(*state0), packed,
                                     hidden_size=HIDDEN_SIZE, time_chunk=8)
    y_seq2 = jax.block_until_ready(y_pad2)[:, :, :OUTPUT_SIZE]
    s_new2 = jax.block_until_ready(s_new2)
    y_ref2, state_ref2 = _reference_rollout(x_seq2, state0, tp, HIDDEN_SIZE)
    assert jnp.allclose(y_seq2, y_ref2, atol=1e-5, rtol=1e-5)
    assert jnp.allclose(s_new2, pack_state(*state_ref2), atol=1e-5, rtol=1e-5)

    # --- single-step API (module.forward semantics) --------------------------
    y1, state1 = fan_forward(x_seq[0], state0, packed,
                             hidden_size=HIDDEN_SIZE, output_size=OUTPUT_SIZE)
    y1 = jax.block_until_ready(y1)
    y1_ref, state1_ref = _reference_step(x_seq[0], state0, tp, HIDDEN_SIZE)
    assert jnp.allclose(y1, y1_ref, atol=1e-5, rtol=1e-5)
    for a, b in zip(state1, state1_ref):
        assert jnp.allclose(a, b, atol=1e-5, rtol=1e-5)

    print("KERNEL_OK")
</pallas_src>

<mosaic_0001>
module attributes {stable_mosaic.version = 11 : i64} {
  func.func @_fused_lstm_rollout_kernel(%arg0: i32, %arg1: memref<8x16xf32, #tpu.memory_space<vmem>>, %arg2: memref<1x128xf32, #tpu.memory_space<vmem>>, %arg3: memref<16x128xf32, #tpu.memory_space<vmem>>, %arg4: memref<32x128xf32, #tpu.memory_space<vmem>>, %arg5: memref<32x128xf32, #tpu.memory_space<vmem>>, %arg6: memref<32x128xf32, #tpu.memory_space<vmem>>, %arg7: memref<32x128xf32, #tpu.memory_space<vmem>>, %arg8: memref<3x128xf32, #tpu.memory_space<vmem>>, %arg9: memref<8x128xf32, #tpu.memory_space<vmem>>, %arg10: memref<1x128xf32, #tpu.memory_space<vmem>>) attributes {dimension_semantics = [#tpu.dimension_semantics<arbitrary>], iteration_bounds = array<i64: 1>, scalar_prefetch = 0 : i64, scratch_operands = 0 : i64, tpu.core_type = #tpu.core_type<tc>, window_params = [{transform_indices = @transform_0, window_bounds = array<i64: 8, 16>}, {pipeline_mode = #tpu.pipeline_mode<synchronous>, transform_indices = @transform_1, window_bounds = array<i64: 1, 128>}, {pipeline_mode = #tpu.pipeline_mode<synchronous>, transform_indices = @transform_2, window_bounds = array<i64: 16, 128>}, {pipeline_mode = #tpu.pipeline_mode<synchronous>, transform_indices = @transform_3, window_bounds = array<i64: 32, 128>}, {pipeline_mode = #tpu.pipeline_mode<synchronous>, transform_indices = @transform_4, window_bounds = array<i64: 32, 128>}, {pipeline_mode = #tpu.pipeline_mode<synchronous>, transform_indices = @transform_5, window_bounds = array<i64: 32, 128>}, {pipeline_mode = #tpu.pipeline_mode<synchronous>, transform_indices = @transform_6, window_bounds = array<i64: 32, 128>}, {pipeline_mode = #tpu.pipeline_mode<synchronous>, transform_indices = @transform_7, window_bounds = array<i64: 3, 128>}, {transform_indices = @transform_8, window_bounds = array<i64: 8, 128>}, {pipeline_mode = #tpu.pipeline_mode<synchronous>, transform_indices = @transform_9, window_bounds = array<i64: 1, 128>}]} {
    %c0_i32 = arith.constant 0 : i32
    %0 = arith.cmpi eq, %arg0, %c0_i32 : i32
    %1 = arith.extui %0 : i1 to i32
    %c0_i32_0 = arith.constant 0 : i32
    %2 = arith.cmpi ne, %1, %c0_i32_0 : i32
    scf.if %2 {
      %c0_103 = arith.constant 0 : index
      %c0_104 = arith.constant 0 : index
      %356 = vector.load %arg2[%c0_103, %c0_104] : memref<1x128xf32, #tpu.memory_space<vmem>>, vector<1x128xf32>
      %c0_105 = arith.constant 0 : index
      %c0_106 = arith.constant 0 : index
      %357 = vector.load %arg10[%c0_105, %c0_106] : memref<1x128xf32, #tpu.memory_space<vmem>>, vector<1x128xf32>
      tpu.vector_store %arg10[%c0_105, %c0_106], %356 {strides = array<i32>} : memref<1x128xf32, #tpu.memory_space<vmem>>, vector<1x128xf32>,
    } else {
    }
    %c0 = arith.constant 0 : index
    %c0_1 = arith.constant 0 : index
    %3 = vector.load %arg3[%c0, %c0_1] : memref<16x128xf32, #tpu.memory_space<vmem>>, vector<16x128xf32>
    %c0_2 = arith.constant 0 : index
    %c0_3 = arith.constant 0 : index
    %4 = vector.load %arg4[%c0_2, %c0_3] : memref<32x128xf32, #tpu.memory_space<vmem>>, vector<32x128xf32>
    %c0_4 = arith.constant 0 : index
    %c0_5 = arith.constant 0 : index
    %5 = vector.load %arg5[%c0_4, %c0_5] : memref<32x128xf32, #tpu.memory_space<vmem>>, vector<32x128xf32>
    %c0_6 = arith.constant 0 : index
    %c0_7 = arith.constant 0 : index
    %6 = vector.load %arg6[%c0_6, %c0_7] : memref<32x128xf32, #tpu.memory_space<vmem>>, vector<32x128xf32>
    %c0_8 = arith.constant 0 : index
    %c0_9 = arith.constant 0 : index
    %7 = vector.load %arg7[%c0_8, %c0_9] : memref<32x128xf32, #tpu.memory_space<vmem>>, vector<32x128xf32>
    %c0_10 = arith.constant 0 : index
    %c0_11 = arith.constant 0 : index
    %8 = vector.load %arg8[%c0_10, %c0_11] : memref<3x128xf32, #tpu.memory_space<vmem>>, vector<1x128xf32>
    %c1 = arith.constant 1 : index
    %c0_12 = arith.constant 0 : index
    %9 = vector.load %arg8[%c1, %c0_12] : memref<3x128xf32, #tpu.memory_space<vmem>>, vector<1x128xf32>
    %c2 = arith.constant 2 : index
    %c0_13 = arith.constant 0 : index
    %10 = vector.load %arg8[%c2, %c0_13] : memref<3x128xf32, #tpu.memory_space<vmem>>, vector<1x128xf32>
    %c0_14 = arith.constant 0 : index
    %c0_15 = arith.constant 0 : index
    %11 = vector.load %arg10[%c0_14, %c0_15] : memref<1x128xf32, #tpu.memory_space<vmem>>, vector<1x128xf32>
    %12 = vector.extract_strided_slice %11 {offsets = [0, 0], sizes = [1, 32], strides = [1, 1]} : vector<1x128xf32> to vector<1x32xf32>
    %13 = vector.extract_strided_slice %11 {offsets = [0, 32], sizes = [1, 32], strides = [1, 1]} : vector<1x128xf32> to vector<1x32xf32>
    %14 = vector.extract_strided_slice %11 {offsets = [0, 64], sizes = [1, 32], strides = [1, 1]} : vector<1x128xf32> to vector<1x32xf32>
    %15 = vector.extract_strided_slice %11 {offsets = [0, 96], sizes = [1, 32], strides = [1, 1]} : vector<1x128xf32> to vector<1x32xf32>
    %c0_16 = arith.constant 0 : index
    %c0_17 = arith.constant 0 : index
    %16 = vector.load %arg1[%c0_16, %c0_17] : memref<8x16xf32, #tpu.memory_space<vmem>>, vector<1x16xf32>
    %cst = arith.constant dense<0.000000e+00> : vector<1x128xf32>
    %17 = tpu.matmul %16, %3, %cst {dimension_numbers = #tpu.dot_dimension_numbers<[1], [0], [0], [1], [0, 0, 1, 1], [], []>} : vector<1x16xf32>, vector<16x128xf32>, vector<1x128xf32> -> vector<1x128xf32>
    %cst_18 = arith.constant dense<0.000000e+00> : vector<1x128xf32>
    %18 = tpu.matmul %12, %4, %cst_18 {dimension_numbers = #tpu.dot_dimension_numbers<[1], [0], [0], [1], [0, 0, 1, 1], [], []>} : vector<1x32xf32>, vector<32x128xf32>, vector<1x128xf32> -> vector<1x128xf32>
    %19 = arith.addf %17, %18 : vector<1x128xf32>
    %20 = arith.addf %19, %8 : vector<1x128xf32>
    %21 = arith.negf %20 : vector<1x128xf32>
    %22 = math.exp %21 : vector<1x128xf32>
    %cst_19 = arith.constant 1.000000e+00 : f32
    %23 = vector.broadcast %cst_19 : f32 to vector<1x128xf32>
    %24 = arith.addf %23, %22 : vector<1x128xf32>
    %25 = arith.divf %23, %24 : vector<1x128xf32>
    %26 = vector.extract_strided_slice %25 {offsets = [0, 0], sizes = [1, 32], strides = [1, 1]} : vector<1x128xf32> to vector<1x32xf32>
    %27 = vector.extract_strided_slice %25 {offsets = [0, 32], sizes = [1, 32], strides = [1, 1]} : vector<1x128xf32> to vector<1x32xf32>
    %28 = vector.extract_strided_slice %25 {offsets = [0, 96], sizes = [1, 32], strides = [1, 1]} : vector<1x128xf32> to vector<1x32xf32>
    %29 = vector.extract_strided_slice %20 {offsets = [0, 64], sizes = [1, 32], strides = [1, 1]} : vector<1x128xf32> to vector<1x32xf32>
    %30 = math.tanh %29 : vector<1x32xf32>
    %31 = arith.mulf %27, %13 : vector<1x32xf32>
    %32 = arith.mulf %26, %30 : vector<1x32xf32>
    %33 = arith.addf %31, %32 : vector<1x32xf32>
    %34 = math.tanh %33 : vector<1x32xf32>
    %35 = arith.mulf %28, %34 : vector<1x32xf32>
    %cst_20 = arith.constant dense<0.000000e+00> : vector<1x128xf32>
    %36 = tpu.matmul %35, %5, %cst_20 {dimension_numbers = #tpu.dot_dimension_numbers<[1], [0], [0], [1], [0, 0, 1, 1], [], []>} : vector<1x32xf32>, vector<32x128xf32>, vector<1x128xf32> -> vector<1x128xf32>
    %cst_21 = arith.constant dense<0.000000e+00> : vector<1x128xf32>
    %37 = tpu.matmul %14, %6, %cst_21 {dimension_numbers = #tpu.dot_dimension_numbers<[1], [0], [0], [1], [0, 0, 1, 1], [], []>} : vector<1x32xf32>, vector<32x128xf32>, vector<1x128xf32> -> vector<1x128xf32>
    %38 = arith.addf %36, %37 : vector<1x128xf32>
    %39 = arith.addf %38, %9 : vector<1x128xf32>
    %40 = arith.negf %39 : vector<1x128xf32>
    %41 = math.exp %40 : vector<1x128xf32>
    %cst_22 = arith.constant 1.000000e+00 : f32
    %42 = vector.broadcast %cst_22 : f32 to vector<1x128xf32>
    %43 = arith.addf %42, %41 : vector<1x128xf32>
    %44 = arith.divf %42, %43 : vector<1x128xf32>
    %45 = vector.extract_strided_slice %44 {offsets = [0, 0], sizes = [1, 32], strides = [1, 1]} : vector<1x128xf32> to vector<1x32xf32>
    %46 = vector.extract_strided_slice %44 {offsets = [0, 32], sizes = [1, 32], strides = [1, 1]} : vector<1x128xf32> to vector<1x32xf32>
    %47 = vector.extract_strided_slice %44 {offsets = [0, 96], sizes = [1, 32], strides = [1, 1]} : vector<1x128xf32> to vector<1x32xf32>
    %48 = vector.extract_strided_slice %39 {offsets = [0, 64], sizes = [1, 32], strides = [1, 1]} : vector<1x128xf32> to vector<1x32xf32>
    %49 = math.tanh %48 : vector<1x32xf32>
    %50 = arith.mulf %46, %15 : vector<1x32xf32>
    %51 = arith.mulf %45, %49 : vector<1x32xf32>
    %52 = arith.addf %50, %51 : vector<1x32xf32>
    %53 = math.tanh %52 : vector<1x32xf32>
    %54 = arith.mulf %47, %53 : vector<1x32xf32>
    %cst_23 = arith.constant dense<0.000000e+00> : vector<1x128xf32>
    %55 = tpu.matmul %54, %7, %cst_23 {dimension_numbers = #tpu.dot_dimension_numbers<[1], [0], [0], [1], [0, 0, 1, 1], [], []>} : vector<1x32xf32>, vector<32x128xf32>, vector<1x128xf32> -> vector<1x128xf32>
    %56 = arith.addf %55, %10 : vector<1x128xf32>
    %c0_24 = arith.constant 0 : index
    %c0_25 = arith.constant 0 : index
    %57 = vector.load %arg9[%c0_24, %c0_25] : memref<8x128xf32, #tpu.memory_space<vmem>>, vector<1x128xf32>
    tpu.vector_store %arg9[%c0_24, %c0_25], %56 {strides = array<i32>} : memref<8x128xf32, #tpu.memory_space<vmem>>, vector<1x128xf32>,
    %c1_26 = arith.constant 1 : index
    %c0_27 = arith.constant 0 : index
    %58 = vector.load %arg1[%c1_26, %c0_27] : memref<8x16xf32, #tpu.memory_space<vmem>>, vector<1x16xf32>
    %cst_28 = arith.constant dense<0.000000e+00> : vector<1x128xf32>
    %59 = tpu.matmul %58, %3, %cst_28 {dimension_numbers = #tpu.dot_dimension_numbers<[1], [0], [0], [1], [0, 0, 1, 1], [], []>} : vector<1x16xf32>, vector<16x128xf32>, vector<1x128xf32> -> vector<1x128xf32>
    %cst_29 = arith.constant dense<0.000000e+00> : vector<1x128xf32>
    %60 = tpu.matmul %35, %4, %cst_29 {dimension_numbers = #tpu.dot_dimension_numbers<[1], [0], [0], [1], [0, 0, 1, 1], [], []>} : vector<1x32xf32>, vector<32x128xf32>, vector<1x128xf32> -> vector<1x128xf32>
    %61 = arith.addf %59, %60 : vector<1x128xf32>
    %62 = arith.addf %61, %8 : vector<1x128xf32>
    %63 = arith.negf %62 : vector<1x128xf32>
    %64 = math.exp %63 : vector<1x128xf32>
    %cst_30 = arith.constant 1.000000e+00 : f32
    %65 = vector.broadcast %cst_30 : f32 to vector<1x128xf32>
    %66 = arith.addf %65, %64 : vector<1x128xf32>
    %67 = arith.divf %65, %66 : vector<1x128xf32>
    %68 = vector.extract_strided_slice %67 {offsets = [0, 0], sizes = [1, 32], strides = [1, 1]} : vector<1x128xf32> to vector<1x32xf32>
    %69 = vector.extract_strided_slice %67 {offsets = [0, 32], sizes = [1, 32], strides = [1, 1]} : vector<1x128xf32> to vector<1x32xf32>
    %70 = vector.extract_strided_slice %67 {offsets = [0, 96], sizes = [1, 32], strides = [1, 1]} : vector<1x128xf32> to vector<1x32xf32>
    %71 = vector.extract_strided_slice %62 {offsets = [0, 64], sizes = [1, 32], strides = [1, 1]} : vector<1x128xf32> to vector<1x32xf32>
    %72 = math.tanh %71 : vector<1x32xf32>
    %73 = arith.mulf %69, %33 : vector<1x32xf32>
    %74 = arith.mulf %68, %72 : vector<1x32xf32>
    %75 = arith.addf %73, %74 : vector<1x32xf32>
    %76 = math.tanh %75 : vector<1x32xf32>
    %77 = arith.mulf %70, %76 : vector<1x32xf32>
    %cst_31 = arith.constant dense<0.000000e+00> : vector<1x128xf32>
    %78 = tpu.matmul %77, %5, %cst_31 {dimension_numbers = #tpu.dot_dimension_numbers<[1], [0], [0], [1], [0, 0, 1, 1], [], []>} : vector<1x32xf32>, vector<32x128xf32>, vector<1x128xf32> -> vector<1x128xf32>
    %cst_32 = arith.constant dense<0.000000e+00> : vector<1x128xf32>
    %79 = tpu.matmul %54, %6, %cst_32 {dimension_numbers = #tpu.dot_dimension_numbers<[1], [0], [0], [1], [0, 0, 1, 1], [], []>} : vector<1x32xf32>, vector<32x128xf32>, vector<1x128xf32> -> vector<1x128xf32>
    %80 = arith.addf %78, %79 : vector<1x128xf32>
    %81 = arith.addf %80, %9 : vector<1x128xf32>
    %82 = arith.negf %81 : vector<1x128xf32>
    %83 = math.exp %82 : vector<1x128xf32>
    %cst_33 = arith.constant 1.000000e+00 : f32
    %84 = vector.broadcast %cst_33 : f32 to vector<1x128xf32>
    %85 = arith.addf %84, %83 : vector<1x128xf32>
    %86 = arith.divf %84, %85 : vector<1x128xf32>
    %87 = vector.extract_strided_slice %86 {offsets = [0, 0], sizes = [1, 32], strides = [1, 1]} : vector<1x128xf32> to vector<1x32xf32>
    %88 = vector.extract_strided_slice %86 {offsets = [0, 32], sizes = [1, 32], strides = [1, 1]} : vector<1x128xf32> to vector<1x32xf32>
    %89 = vector.extract_strided_slice %86 {offsets = [0, 96], sizes = [1, 32], strides = [1, 1]} : vector<1x128xf32> to vector<1x32xf32>
    %90 = vector.extract_strided_slice %81 {offsets = [0, 64], sizes = [1, 32], strides = [1, 1]} : vector<1x128xf32> to vector<1x32xf32>
    %91 = math.tanh %90 : vector<1x32xf32>
    %92 = arith.mulf %88, %52 : vector<1x32xf32>
    %93 = arith.mulf %87, %91 : vector<1x32xf32>
    %94 = arith.addf %92, %93 : vector<1x32xf32>
    %95 = math.tanh %94 : vector<1x32xf32>
    %96 = arith.mulf %89, %95 : vector<1x32xf32>
    %cst_34 = arith.constant dense<0.000000e+00> : vector<1x128xf32>
    %97 = tpu.matmul %96, %7, %cst_34 {dimension_numbers = #tpu.dot_dimension_numbers<[1], [0], [0], [1], [0, 0, 1, 1], [], []>} : vector<1x32xf32>, vector<32x128xf32>, vector<1x128xf32> -> vector<1x128xf32>
    %98 = arith.addf %97, %10 : vector<1x128xf32>
    %c1_35 = arith.constant 1 : index
    %c0_36 = arith.constant 0 : index
    %99 = vector.load %arg9[%c1_35, %c0_36] : memref<8x128xf32, #tpu.memory_space<vmem>>, vector<1x128xf32>
    tpu.vector_store %arg9[%c1_35, %c0_36], %98 {strides = array<i32>} : memref<8x128xf32, #tpu.memory_space<vmem>>, vector<1x128xf32>,
    %c2_37 = arith.constant 2 : index
    %c0_38 = arith.constant 0 : index
    %100 = vector.load %arg1[%c2_37, %c0_38] : memref<8x16xf32, #tpu.memory_space<vmem>>, vector<1x16xf32>
    %cst_39 = arith.constant dense<0.000000e+00> : vector<1x128xf32>
    %101 = tpu.matmul %100, %3, %cst_39 {dimension_numbers = #tpu.dot_dimension_numbers<[1], [0], [0], [1], [0, 0, 1, 1], [], []>} : vector<1x16xf32>, vector<16x128xf32>, vector<1x128xf32> -> vector<1x128xf32>
    %cst_40 = arith.constant dense<0.000000e+00> : vector<1x128xf32>
    %102 = tpu.matmul %77, %4, %cst_40 {dimension_numbers = #tpu.dot_dimension_numbers<[1], [0], [0], [1], [0, 0, 1, 1], [], []>} : vector<1x32xf32>, vector<32x128xf32>, vector<1x128xf32> -> vector<1x128xf32>
    %103 = arith.addf %101, %102 : vector<1x128xf32>
    %104 = arith.addf %103, %8 : vector<1x128xf32>
    %105 = arith.negf %104 : vector<1x128xf32>
    %106 = math.exp %105 : vector<1x128xf32>
    %cst_41 = arith.constant 1.000000e+00 : f32
    %107 = vector.broadcast %cst_41 : f32 to vector<1x128xf32>
    %108 = arith.addf %107, %106 : vector<1x128xf32>
    %109 = arith.divf %107, %108 : vector<1x128xf32>
    %110 = vector.extract_strided_slice %109 {offsets = [0, 0], sizes = [1, 32], strides = [1, 1]} : vector<1x128xf32> to vector<1x32xf32>
    %111 = vector.extract_strided_slice %109 {offsets = [0, 32], sizes = [1, 32], strides = [1, 1]} : vector<1x128xf32> to vector<1x32xf32>
    %112 = vector.extract_strided_slice %109 {offsets = [0, 96], sizes = [1, 32], strides = [1, 1]} : vector<1x128xf32> to vector<1x32xf32>
    %113 = vector.extract_strided_slice %104 {offsets = [0, 64], sizes = [1, 32], strides = [1, 1]} : vector<1x128xf32> to vector<1x32xf32>
    %114 = math.tanh %113 : vector<1x32xf32>
    %115 = arith.mulf %111, %75 : vector<1x32xf32>
    %116 = arith.mulf %110, %114 : vector<1x32xf32>
    %117 = arith.addf %115, %116 : vector<1x32xf32>
    %118 = math.tanh %117 : vector<1x32xf32>
    %119 = arith.mulf %112, %118 : vector<1x32xf32>
    %cst_42 = arith.constant dense<0.000000e+00> : vector<1x128xf32>
    %120 = tpu.matmul %119, %5, %cst_42 {dimension_numbers = #tpu.dot_dimension_numbers<[1], [0], [0], [1], [0, 0, 1, 1], [], []>} : vector<1x32xf32>, vector<32x128xf32>, vector<1x128xf32> -> vector<1x128xf32>
    %cst_43 = arith.constant dense<0.000000e+00> : vector<1x128xf32>
    %121 = tpu.matmul %96, %6, %cst_43 {dimension_numbers = #tpu.dot_dimension_numbers<[1], [0], [0], [1], [0, 0, 1, 1], [], []>} : vector<1x32xf32>, vector<32x128xf32>, vector<1x128xf32> -> vector<1x128xf32>
    %122 = arith.addf %120, %121 : vector<1x128xf32>
    %123 = arith.addf %122, %9 : vector<1x128xf32>
    %124 = arith.negf %123 : vector<1x128xf32>
    %125 = math.exp %124 : vector<1x128xf32>
    %cst_44 = arith.constant 1.000000e+00 : f32
    %126 = vector.broadcast %cst_44 : f32 to vector<1x128xf32>
    %127 = arith.addf %126, %125 : vector<1x128xf32>
    %128 = arith.divf %126, %127 : vector<1x128xf32>
    %129 = vector.extract_strided_slice %128 {offsets = [0, 0], sizes = [1, 32], strides = [1, 1]} : vector<1x128xf32> to vector<1x32xf32>
    %130 = vector.extract_strided_slice %128 {offsets = [0, 32], sizes = [1, 32], strides = [1, 1]} : vector<1x128xf32> to vector<1x32xf32>
    %131 = vector.extract_strided_slice %128 {offsets = [0, 96], sizes = [1, 32], strides = [1, 1]} : vector<1x128xf32> to vector<1x32xf32>
    %132 = vector.extract_strided_slice %123 {offsets = [0, 64], sizes = [1, 32], strides = [1, 1]} : vector<1x128xf32> to vector<1x32xf32>
    %133 = math.tanh %132 : vector<1x32xf32>
    %134 = arith.mulf %130, %94 : vector<1x32xf32>
    %135 = arith.mulf %129, %133 : vector<1x32xf32>
    %136 = arith.addf %134, %135 : vector<1x32xf32>
    %137 = math.tanh %136 : vector<1x32xf32>
    %138 = arith.mulf %131, %137 : vector<1x32xf32>
    %cst_45 = arith.constant dense<0.000000e+00> : vector<1x128xf32>
    %139 = tpu.matmul %138, %7, %cst_45 {dimension_numbers = #tpu.dot_dimension_numbers<[1], [0], [0], [1], [0, 0, 1, 1], [], []>} : vector<1x32xf32>, vector<32x128xf32>, vector<1x128xf32> -> vector<1x128xf32>
    %140 = arith.addf %139, %10 : vector<1x128xf32>
    %c2_46 = arith.constant 2 : index
    %c0_47 = arith.constant 0 : index
    %141 = vector.load %arg9[%c2_46, %c0_47] : memref<8x128xf32, #tpu.memory_space<vmem>>, vector<1x128xf32>
    tpu.vector_store %arg9[%c2_46, %c0_47], %140 {strides = array<i32>} : memref<8x128xf32, #tpu.memory_space<vmem>>, vector<1x128xf32>,
    %c3 = arith.constant 3 : index
    %c0_48 = arith.constant 0 : index
    %142 = vector.load %arg1[%c3, %c0_48] : memref<8x16xf32, #tpu.memory_space<vmem>>, vector<1x16xf32>
    %cst_49 = arith.constant dense<0.000000e+00> : vector<1x128xf32>
    %143 = tpu.matmul %142, %3, %cst_49 {dimension_numbers = #tpu.dot_dimension_numbers<[1], [0], [0], [1], [0, 0, 1, 1], [], []>} : vector<1x16xf32>, vector<16x128xf32>, vector<1x128xf32> -> vector<1x128xf32>
    %cst_50 = arith.constant dense<0.000000e+00> : vector<1x128xf32>
    %144 = tpu.matmul %119, %4, %cst_50 {dimension_numbers = #tpu.dot_dimension_numbers<[1], [0], [0], [1], [0, 0, 1, 1], [], []>} : vector<1x32xf32>, vector<32x128xf32>, vector<1x128xf32> -> vector<1x128xf32>
    %145 = arith.addf %143, %144 : vector<1x128xf32>
    %146 = arith.addf %145, %8 : vector<1x128xf32>
    %147 = arith.negf %146 : vector<1x128xf32>
    %148 = math.exp %147 : vector<1x128xf32>
    %cst_51 = arith.constant 1.000000e+00 : f32
    %149 = vector.broadcast %cst_51 : f32 to vector<1x128xf32>
    %150 = arith.addf %149, %148 : vector<1x128xf32>
    %151 = arith.divf %149, %150 : vector<1x128xf32>
    %152 = vector.extract_strided_slice %151 {offsets = [0, 0], sizes = [1, 32], strides = [1, 1]} : vector<1x128xf32> to vector<1x32xf32>
    %153 = vector.extract_strided_slice %151 {offsets = [0, 32], sizes = [1, 32], strides = [1, 1]} : vector<1x128xf32> to vector<1x32xf32>
    %154 = vector.extract_strided_slice %151 {offsets = [0, 96], sizes = [1, 32], strides = [1, 1]} : vector<1x128xf32> to vector<1x32xf32>
    %155 = vector.extract_strided_slice %146 {offsets = [0, 64], sizes = [1, 32], strides = [1, 1]} : vector<1x128xf32> to vector<1x32xf32>
    %156 = math.tanh %155 : vector<1x32xf32>
    %157 = arith.mulf %153, %117 : vector<1x32xf32>
    %158 = arith.mulf %152, %156 : vector<1x32xf32>
    %159 = arith.addf %157, %158 : vector<1x32xf32>
    %160 = math.tanh %159 : vector<1x32xf32>
    %161 = arith.mulf %154, %160 : vector<1x32xf32>
    %cst_52 = arith.constant dense<0.000000e+00> : vector<1x128xf32>
    %162 = tpu.matmul %161, %5, %cst_52 {dimension_numbers = #tpu.dot_dimension_numbers<[1], [0], [0], [1], [0, 0, 1, 1], [], []>} : vector<1x32xf32>, vector<32x128xf32>, vector<1x128xf32> -> vector<1x128xf32>
    %cst_53 = arith.constant dense<0.000000e+00> : vector<1x128xf32>
    %163 = tpu.matmul %138, %6, %cst_53 {dimension_numbers = #tpu.dot_dimension_numbers<[1], [0], [0], [1], [0, 0, 1, 1], [], []>} : vector<1x32xf32>, vector<32x128xf32>, vector<1x128xf32> -> vector<1x128xf32>
    %164 = arith.addf %162, %163 : vector<1x128xf32>
    %165 = arith.addf %164, %9 : vector<1x128xf32>
    %166 = arith.negf %165 : vector<1x128xf32>
    %167 = math.exp %166 : vector<1x128xf32>
    %cst_54 = arith.constant 1.000000e+00 : f32
    %168 = vector.broadcast %cst_54 : f32 to vector<1x128xf32>
    %169 = arith.addf %168, %167 : vector<1x128xf32>
    %170 = arith.divf %168, %169 : vector<1x128xf32>
    %171 = vector.extract_strided_slice %170 {offsets = [0, 0], sizes = [1, 32], strides = [1, 1]} : vector<1x128xf32> to vector<1x32xf32>
    %172 = vector.extract_strided_slice %170 {offsets = [0, 32], sizes = [1, 32], strides = [1, 1]} : vector<1x128xf32> to vector<1x32xf32>
    %173 = vector.extract_strided_slice %170 {offsets = [0, 96], sizes = [1, 32], strides = [1, 1]} : vector<1x128xf32> to vector<1x32xf32>
    %174 = vector.extract_strided_slice %165 {offsets = [0, 64], sizes = [1, 32], strides = [1, 1]} : vector<1x128xf32> to vector<1x32xf32>
    %175 = math.tanh %174 : vector<1x32xf32>
    %176 = arith.mulf %172, %136 : vector<1x32xf32>
    %177 = arith.mulf %171, %175 : vector<1x32xf32>
    %178 = arith.addf %176, %177 : vector<1x32xf32>
    %179 = math.tanh %178 : vector<1x32xf32>
    %180 = arith.mulf %173, %179 : vector<1x32xf32>
    %cst_55 = arith.constant dense<0.000000e+00> : vector<1x128xf32>
    %181 = tpu.matmul %180, %7, %cst_55 {dimension_numbers = #tpu.dot_dimension_numbers<[1], [0], [0], [1], [0, 0, 1, 1], [], []>} : vector<1x32xf32>, vector<32x128xf32>, vector<1x128xf32> -> vector<1x128xf32>
    %182 = arith.addf %181, %10 : vector<1x128xf32>
    %c3_56 = arith.constant 3 : index
    %c0_57 = arith.constant 0 : index
    %183 = vector.load %arg9[%c3_56, %c0_57] : memref<8x128xf32, #tpu.memory_space<vmem>>, vector<1x128xf32>
    tpu.vector_store %arg9[%c3_56, %c0_57], %182 {strides = array<i32>} : memref<8x128xf32, #tpu.memory_space<vmem>>, vector<1x128xf32>,
    %c4 = arith.constant 4 : index
    %c0_58 = arith.constant 0 : index
    %184 = vector.load %arg1[%c4, %c0_58] : memref<8x16xf32, #tpu.memory_space<vmem>>, vector<1x16xf32>
    %cst_59 = arith.constant dense<0.000000e+00> : vector<1x128xf32>
    %185 = tpu.matmul %184, %3, %cst_59 {dimension_numbers = #tpu.dot_dimension_numbers<[1], [0], [0], [1], [0, 0, 1, 1], [], []>} : vector<1x16xf32>, vector<16x128xf32>, vector<1x128xf32> -> vector<1x128xf32>
    %cst_60 = arith.constant dense<0.000000e+00> : vector<1x128xf32>
    %186 = tpu.matmul %161, %4, %cst_60 {dimension_numbers = #tpu.dot_dimension_numbers<[1], [0], [0], [1], [0, 0, 1, 1], [], []>} : vector<1x32xf32>, vector<32x128xf32>, vector<1x128xf32> -> vector<1x128xf32>
    %187 = arith.addf %185, %186 : vector<1x128xf32>
    %188 = arith.addf %187, %8 : vector<1x128xf32>
    %189 = arith.negf %188 : vector<1x128xf32>
    %190 = math.exp %189 : vector<1x128xf32>
    %cst_61 = arith.constant 1.000000e+00 : f32
    %191 = vector.broadcast %cst_61 : f32 to vector<1x128xf32>
    %192 = arith.addf %191, %190 : vector<1x128xf32>
    %193 = arith.divf %191, %192 : vector<1x128xf32>
    %194 = vector.extract_strided_slice %193 {offsets = [0, 0], sizes = [1, 32], strides = [1, 1]} : vector<1x128xf32> to vector<1x32xf32>
    %195 = vector.extract_strided_slice %193 {offsets = [0, 32], sizes = [1, 32], strides = [1, 1]} : vector<1x128xf32> to vector<1x32xf32>
    %196 = vector.extract_strided_slice %193 {offsets = [0, 96], sizes = [1, 32], strides = [1, 1]} : vector<1x128xf32> to vector<1x32xf32>
    %197 = vector.extract_strided_slice %188 {offsets = [0, 64], sizes = [1, 32], strides = [1, 1]} : vector<1x128xf32> to vector<1x32xf32>
    %198 = math.tanh %197 : vector<1x32xf32>
    %199 = arith.mulf %195, %159 : vector<1x32xf32>
    %200 = arith.mulf %194, %198 : vector<1x32xf32>
    %201 = arith.addf %199, %200 : vector<1x32xf32>
    %202 = math.tanh %201 : vector<1x32xf32>
    %203 = arith.mulf %196, %202 : vector<1x32xf32>
    %cst_62 = arith.constant dense<0.000000e+00> : vector<1x128xf32>
    %204 = tpu.matmul %203, %5, %cst_62 {dimension_numbers = #tpu.dot_dimension_numbers<[1], [0], [0], [1], [0, 0, 1, 1], [], []>} : vector<1x32xf32>, vector<32x128xf32>, vector<1x128xf32> -> vector<1x128xf32>
    %cst_63 = arith.constant dense<0.000000e+00> : vector<1x128xf32>
    %205 = tpu.matmul %180, %6, %cst_63 {dimension_numbers = #tpu.dot_dimension_numbers<[1], [0], [0], [1], [0, 0, 1, 1], [], []>} : vector<1x32xf32>, vector<32x128xf32>, vector<1x128xf32> -> vector<1x128xf32>
    %206 = arith.addf %204, %205 : vector<1x128xf32>
    %207 = arith.addf %206, %9 : vector<1x128xf32>
    %208 = arith.negf %207 : vector<1x128xf32>
    %209 = math.exp %208 : vector<1x128xf32>
    %cst_64 = arith.constant 1.000000e+00 : f32
    %210 = vector.broadcast %cst_64 : f32 to vector<1x128xf32>
    %211 = arith.addf %210, %209 : vector<1x128xf32>
    %212 = arith.divf %210, %211 : vector<1x128xf32>
    %213 = vector.extract_strided_slice %212 {offsets = [0, 0], sizes = [1, 32], strides = [1, 1]} : vector<1x128xf32> to vector<1x32xf32>
    %214 = vector.extract_strided_slice %212 {offsets = [0, 32], sizes = [1, 32], strides = [1, 1]} : vector<1x128xf32> to vector<1x32xf32>
    %215 = vector.extract_strided_slice %212 {offsets = [0, 96], sizes = [1, 32], strides = [1, 1]} : vector<1x128xf32> to vector<1x32xf32>
    %216 = vector.extract_strided_slice %207 {offsets = [0, 64], sizes = [1, 32], strides = [1, 1]} : vector<1x128xf32> to vector<1x32xf32>
    %217 = math.tanh %216 : vector<1x32xf32>
    %218 = arith.mulf %214, %178 : vector<1x32xf32>
    %219 = arith.mulf %213, %217 : vector<1x32xf32>
    %220 = arith.addf %218, %219 : vector<1x32xf32>
    %221 = math.tanh %220 : vector<1x32xf32>
    %222 = arith.mulf %215, %221 : vector<1x32xf32>
    %cst_65 = arith.constant dense<0.000000e+00> : vector<1x128xf32>
    %223 = tpu.matmul %222, %7, %cst_65 {dimension_numbers = #tpu.dot_dimension_numbers<[1], [0], [0], [1], [0, 0, 1, 1], [], []>} : vector<1x32xf32>, vector<32x128xf32>, vector<1x128xf32> -> vector<1x128xf32>
    %224 = arith.addf %223, %10 : vector<1x128xf32>
    %c4_66 = arith.constant 4 : index
    %c0_67 = arith.constant 0 : index
    %225 = vector.load %arg9[%c4_66, %c0_67] : memref<8x128xf32, #tpu.memory_space<vmem>>, vector<1x128xf32>
    tpu.vector_store %arg9[%c4_66, %c0_67], %224 {strides = array<i32>} : memref<8x128xf32, #tpu.memory_space<vmem>>, vector<1x128xf32>,
    %c5 = arith.constant 5 : index
    %c0_68 = arith.constant 0 : index
    %226 = vector.load %arg1[%c5, %c0_68] : memref<8x16xf32, #tpu.memory_space<vmem>>, vector<1x16xf32>
    %cst_69 = arith.constant dense<0.000000e+00> : vector<1x128xf32>
    %227 = tpu.matmul %226, %3, %cst_69 {dimension_numbers = #tpu.dot_dimension_numbers<[1], [0], [0], [1], [0, 0, 1, 1], [], []>} : vector<1x16xf32>, vector<16x128xf32>, vector<1x128xf32> -> vector<1x128xf32>
    %cst_70 = arith.constant dense<0.000000e+00> : vector<1x128xf32>
    %228 = tpu.matmul %203, %4, %cst_70 {dimension_numbers = #tpu.dot_dimension_numbers<[1], [0], [0], [1], [0, 0, 1, 1], [], []>} : vector<1x32xf32>, vector<32x128xf32>, vector<1x128xf32> -> vector<1x128xf32>
    %229 = arith.addf %227, %228 : vector<1x128xf32>
    %230 = arith.addf %229, %8 : vector<1x128xf32>
    %231 = arith.negf %230 : vector<1x128xf32>
    %232 = math.exp %231 : vector<1x128xf32>
    %cst_71 = arith.constant 1.000000e+00 : f32
    %233 = vector.broadcast %cst_71 : f32 to vector<1x128xf32>
    %234 = arith.addf %233, %232 : vector<1x128xf32>
    %235 = arith.divf %233, %234 : vector<1x128xf32>
    %236 = vector.extract_strided_slice %235 {offsets = [0, 0], sizes = [1, 32], strides = [1, 1]} : vector<1x128xf32> to vector<1x32xf32>
    %237 = vector.extract_strided_slice %235 {offsets = [0, 32], sizes = [1, 32], strides = [1, 1]} : vector<1x128xf32> to vector<1x32xf32>
    %238 = vector.extract_strided_slice %235 {offsets = [0, 96], sizes = [1, 32], strides = [1, 1]} : vector<1x128xf32> to vector<1x32xf32>
    %239 = vector.extract_strided_slice %230 {offsets = [0, 64], sizes = [1, 32], strides = [1, 1]} : vector<1x128xf32> to vector<1x32xf32>
    %240 = math.tanh %239 : vector<1x32xf32>
    %241 = arith.mulf %237, %201 : vector<1x32xf32>
    %242 = arith.mulf %236, %240 : vector<1x32xf32>
    %243 = arith.addf %241, %242 : vector<1x32xf32>
    %244 = math.tanh %243 : vector<1x32xf32>
    %245 = arith.mulf %238, %244 : vector<1x32xf32>
    %cst_72 = arith.constant dense<0.000000e+00> : vector<1x128xf32>
    %246 = tpu.matmul %245, %5, %cst_72 {dimension_numbers = #tpu.dot_dimension_numbers<[1], [0], [0], [1], [0, 0, 1, 1], [], []>} : vector<1x32xf32>, vector<32x128xf32>, vector<1x128xf32> -> vector<1x128xf32>
    %cst_73 = arith.constant dense<0.000000e+00> : vector<1x128xf32>
    %247 = tpu.matmul %222, %6, %cst_73 {dimension_numbers = #tpu.dot_dimension_numbers<[1], [0], [0], [1], [0, 0, 1, 1], [], []>} : vector<1x32xf32>, vector<32x128xf32>, vector<1x128xf32> -> vector<1x128xf32>
    %248 = arith.addf %246, %247 : vector<1x128xf32>
    %249 = arith.addf %248, %9 : vector<1x128xf32>
    %250 = arith.negf %249 : vector<1x128xf32>
    %251 = math.exp %250 : vector<1x128xf32>
    %cst_74 = arith.constant 1.000000e+00 : f32
    %252 = vector.broadcast %cst_74 : f32 to vector<1x128xf32>
    %253 = arith.addf %252, %251 : vector<1x128xf32>
    %254 = arith.divf %252, %253 : vector<1x128xf32>
    %255 = vector.extract_strided_slice %254 {offsets = [0, 0], sizes = [1, 32], strides = [1, 1]} : vector<1x128xf32> to vector<1x32xf32>
    %256 = vector.extract_strided_slice %254 {offsets = [0, 32], sizes = [1, 32], strides = [1, 1]} : vector<1x128xf32> to vector<1x32xf32>
    %257 = vector.extract_strided_slice %254 {offsets = [0, 96], sizes = [1, 32], strides = [1, 1]} : vector<1x128xf32> to vector<1x32xf32>
    %258 = vector.extract_strided_slice %249 {offsets = [0, 64], sizes = [1, 32], strides = [1, 1]} : vector<1x128xf32> to vector<1x32xf32>
    %259 = math.tanh %258 : vector<1x32xf32>
    %260 = arith.mulf %256, %220 : vector<1x32xf32>
    %261 = arith.mulf %255, %259 : vector<1x32xf32>
    %262 = arith.addf %260, %261 : vector<1x32xf32>
    %263 = math.tanh %262 : vector<1x32xf32>
    %264 = arith.mulf %257, %263 : vector<1x32xf32>
    %cst_75 = arith.constant dense<0.000000e+00> : vector<1x128xf32>
    %265 = tpu.matmul %264, %7, %cst_75 {dimension_numbers = #tpu.dot_dimension_numbers<[1], [0], [0], [1], [0, 0, 1, 1], [], []>} : vector<1x32xf32>, vector<32x128xf32>, vector<1x128xf32> -> vector<1x128xf32>
    %266 = arith.addf %265, %10 : vector<1x128xf32>
    %c5_76 = arith.constant 5 : index
    %c0_77 = arith.constant 0 : index
    %267 = vector.load %arg9[%c5_76, %c0_77] : memref<8x128xf32, #tpu.memory_space<vmem>>, vector<1x128xf32>
    tpu.vector_store %arg9[%c5_76, %c0_77], %266 {strides = array<i32>} : memref<8x128xf32, #tpu.memory_space<vmem>>, vector<1x128xf32>,
    %c6 = arith.constant 6 : index
    %c0_78 = arith.constant 0 : index
    %268 = vector.load %arg1[%c6, %c0_78] : memref<8x16xf32, #tpu.memory_space<vmem>>, vector<1x16xf32>
    %cst_79 = arith.constant dense<0.000000e+00> : vector<1x128xf32>
    %269 = tpu.matmul %268, %3, %cst_79 {dimension_numbers = #tpu.dot_dimension_numbers<[1], [0], [0], [1], [0, 0, 1, 1], [], []>} : vector<1x16xf32>, vector<16x128xf32>, vector<1x128xf32> -> vector<1x128xf32>
    %cst_80 = arith.constant dense<0.000000e+00> : vector<1x128xf32>
    %270 = tpu.matmul %245, %4, %cst_80 {dimension_numbers = #tpu.dot_dimension_numbers<[1], [0], [0], [1], [0, 0, 1, 1], [], []>} : vector<1x32xf32>, vector<32x128xf32>, vector<1x128xf32> -> vector<1x128xf32>
    %271 = arith.addf %269, %270 : vector<1x128xf32>
    %272 = arith.addf %271, %8 : vector<1x128xf32>
    %273 = arith.negf %272 : vector<1x128xf32>
    %274 = math.exp %273 : vector<1x128xf32>
    %cst_81 = arith.constant 1.000000e+00 : f32
    %275 = vector.broadcast %cst_81 : f32 to vector<1x128xf32>
    %276 = arith.addf %275, %274 : vector<1x128xf32>
    %277 = arith.divf %275, %276 : vector<1x128xf32>
    %278 = vector.extract_strided_slice %277 {offsets = [0, 0], sizes = [1, 32], strides = [1, 1]} : vector<1x128xf32> to vector<1x32xf32>
    %279 = vector.extract_strided_slice %277 {offsets = [0, 32], sizes = [1, 32], strides = [1, 1]} : vector<1x128xf32> to vector<1x32xf32>
    %280 = vector.extract_strided_slice %277 {offsets = [0, 96], sizes = [1, 32], strides = [1, 1]} : vector<1x128xf32> to vector<1x32xf32>
    %281 = vector.extract_strided_slice %272 {offsets = [0, 64], sizes = [1, 32], strides = [1, 1]} : vector<1x128xf32> to vector<1x32xf32>
    %282 = math.tanh %281 : vector<1x32xf32>
    %283 = arith.mulf %279, %243 : vector<1x32xf32>
    %284 = arith.mulf %278, %282 : vector<1x32xf32>
    %285 = arith.addf %283, %284 : vector<1x32xf32>
    %286 = math.tanh %285 : vector<1x32xf32>
    %287 = arith.mulf %280, %286 : vector<1x32xf32>
    %cst_82 = arith.constant dense<0.000000e+00> : vector<1x128xf32>
    %288 = tpu.matmul %287, %5, %cst_82 {dimension_numbers = #tpu.dot_dimension_numbers<[1], [0], [0], [1], [0, 0, 1, 1], [], []>} : vector<1x32xf32>, vector<32x128xf32>, vector<1x128xf32> -> vector<1x128xf32>
    %cst_83 = arith.constant dense<0.000000e+00> : vector<1x128xf32>
    %289 = tpu.matmul %264, %6, %cst_83 {dimension_numbers = #tpu.dot_dimension_numbers<[1], [0], [0], [1], [0, 0, 1, 1], [], []>} : vector<1x32xf32>, vector<32x128xf32>, vector<1x128xf32> -> vector<1x128xf32>
    %290 = arith.addf %288, %289 : vector<1x128xf32>
    %291 = arith.addf %290, %9 : vector<1x128xf32>
    %292 = arith.negf %291 : vector<1x128xf32>
    %293 = math.exp %292 : vector<1x128xf32>
    %cst_84 = arith.constant 1.000000e+00 : f32
    %294 = vector.broadcast %cst_84 : f32 to vector<1x128xf32>
    %295 = arith.addf %294, %293 : vector<1x128xf32>
    %296 = arith.divf %294, %295 : vector<1x128xf32>
    %297 = vector.extract_strided_slice %296 {offsets = [0, 0], sizes = [1, 32], strides = [1, 1]} : vector<1x128xf32> to vector<1x32xf32>
    %298 = vector.extract_strided_slice %296 {offsets = [0, 32], sizes = [1, 32], strides = [1, 1]} : vector<1x128xf32> to vector<1x32xf32>
    %299 = vector.extract_strided_slice %296 {offsets = [0, 96], sizes = [1, 32], strides = [1, 1]} : vector<1x128xf32> to vector<1x32xf32>
    %300 = vector.extract_strided_slice %291 {offsets = [0, 64], sizes = [1, 32], strides = [1, 1]} : vector<1x128xf32> to vector<1x32xf32>
    %301 = math.tanh %300 : vector<1x32xf32>
    %302 = arith.mulf %298, %262 : vector<1x32xf32>
    %303 = arith.mulf %297, %301 : vector<1x32xf32>
    %304 = arith.addf %302, %303 : vector<1x32xf32>
    %305 = math.tanh %304 : vector<1x32xf32>
    %306 = arith.mulf %299, %305 : vector<1x32xf32>
    %cst_85 = arith.constant dense<0.000000e+00> : vector<1x128xf32>
    %307 = tpu.matmul %306, %7, %cst_85 {dimension_numbers = #tpu.dot_dimension_numbers<[1], [0], [0], [1], [0, 0, 1, 1], [], []>} : vector<1x32xf32>, vector<32x128xf32>, vector<1x128xf32> -> vector<1x128xf32>
    %308 = arith.addf %307, %10 : vector<1x128xf32>
    %c6_86 = arith.constant 6 : index
    %c0_87 = arith.constant 0 : index
    %309 = vector.load %arg9[%c6_86, %c0_87] : memref<8x128xf32, #tpu.memory_space<vmem>>, vector<1x128xf32>
    tpu.vector_store %arg9[%c6_86, %c0_87], %308 {strides = array<i32>} : memref<8x128xf32, #tpu.memory_space<vmem>>, vector<1x128xf32>,
    %c7 = arith.constant 7 : index
    %c0_88 = arith.constant 0 : index
    %310 = vector.load %arg1[%c7, %c0_88] : memref<8x16xf32, #tpu.memory_space<vmem>>, vector<1x16xf32>
    %cst_89 = arith.constant dense<0.000000e+00> : vector<1x128xf32>
    %311 = tpu.matmul %310, %3, %cst_89 {dimension_numbers = #tpu.dot_dimension_numbers<[1], [0], [0], [1], [0, 0, 1, 1], [], []>} : vector<1x16xf32>, vector<16x128xf32>, vector<1x128xf32> -> vector<1x128xf32>
    %cst_90 = arith.constant dense<0.000000e+00> : vector<1x128xf32>
    %312 = tpu.matmul %287, %4, %cst_90 {dimension_numbers = #tpu.dot_dimension_numbers<[1], [0], [0], [1], [0, 0, 1, 1], [], []>} : vector<1x32xf32>, vector<32x128xf32>, vector<1x128xf32> -> vector<1x128xf32>
    %313 = arith.addf %311, %312 : vector<1x128xf32>
    %314 = arith.addf %313, %8 : vector<1x128xf32>
    %315 = arith.negf %314 : vector<1x128xf32>
    %316 = math.exp %315 : vector<1x128xf32>
    %cst_91 = arith.constant 1.000000e+00 : f32
    %317 = vector.broadcast %cst_91 : f32 to vector<1x128xf32>
    %318 = arith.addf %317, %316 : vector<1x128xf32>
    %319 = arith.divf %317, %318 : vector<1x128xf32>
    %320 = vector.extract_strided_slice %319 {offsets = [0, 0], sizes = [1, 32], strides = [1, 1]} : vector<1x128xf32> to vector<1x32xf32>
    %321 = vector.extract_strided_slice %319 {offsets = [0, 32], sizes = [1, 32], strides = [1, 1]} : vector<1x128xf32> to vector<1x32xf32>
    %322 = vector.extract_strided_slice %319 {offsets = [0, 96], sizes = [1, 32], strides = [1, 1]} : vector<1x128xf32> to vector<1x32xf32>
    %323 = vector.extract_strided_slice %314 {offsets = [0, 64], sizes = [1, 32], strides = [1, 1]} : vector<1x128xf32> to vector<1x32xf32>
    %324 = math.tanh %323 : vector<1x32xf32>
    %325 = arith.mulf %321, %285 : vector<1x32xf32>
    %326 = arith.mulf %320, %324 : vector<1x32xf32>
    %327 = arith.addf %325, %326 : vector<1x32xf32>
    %328 = math.tanh %327 : vector<1x32xf32>
    %329 = arith.mulf %322, %328 : vector<1x32xf32>
    %cst_92 = arith.constant dense<0.000000e+00> : vector<1x128xf32>
    %330 = tpu.matmul %329, %5, %cst_92 {dimension_numbers = #tpu.dot_dimension_numbers<[1], [0], [0], [1], [0, 0, 1, 1], [], []>} : vector<1x32xf32>, vector<32x128xf32>, vector<1x128xf32> -> vector<1x128xf32>
    %cst_93 = arith.constant dense<0.000000e+00> : vector<1x128xf32>
    %331 = tpu.matmul %306, %6, %cst_93 {dimension_numbers = #tpu.dot_dimension_numbers<[1], [0], [0], [1], [0, 0, 1, 1], [], []>} : vector<1x32xf32>, vector<32x128xf32>, vector<1x128xf32> -> vector<1x128xf32>
    %332 = arith.addf %330, %331 : vector<1x128xf32>
    %333 = arith.addf %332, %9 : vector<1x128xf32>
    %334 = arith.negf %333 : vector<1x128xf32>
    %335 = math.exp %334 : vector<1x128xf32>
    %cst_94 = arith.constant 1.000000e+00 : f32
    %336 = vector.broadcast %cst_94 : f32 to vector<1x128xf32>
    %337 = arith.addf %336, %335 : vector<1x128xf32>
    %338 = arith.divf %336, %337 : vector<1x128xf32>
    %339 = vector.extract_strided_slice %338 {offsets = [0, 0], sizes = [1, 32], strides = [1, 1]} : vector<1x128xf32> to vector<1x32xf32>
    %340 = vector.extract_strided_slice %338 {offsets = [0, 32], sizes = [1, 32], strides = [1, 1]} : vector<1x128xf32> to vector<1x32xf32>
    %341 = vector.extract_strided_slice %338 {offsets = [0, 96], sizes = [1, 32], strides = [1, 1]} : vector<1x128xf32> to vector<1x32xf32>
    %342 = vector.extract_strided_slice %333 {offsets = [0, 64], sizes = [1, 32], strides = [1, 1]} : vector<1x128xf32> to vector<1x32xf32>
    %343 = math.tanh %342 : vector<1x32xf32>
    %344 = arith.mulf %340, %304 : vector<1x32xf32>
    %345 = arith.mulf %339, %343 : vector<1x32xf32>
    %346 = arith.addf %344, %345 : vector<1x32xf32>
    %347 = math.tanh %346 : vector<1x32xf32>
    %348 = arith.mulf %341, %347 : vector<1x32xf32>
    %cst_95 = arith.constant dense<0.000000e+00> : vector<1x128xf32>
    %349 = tpu.matmul %348, %7, %cst_95 {dimension_numbers = #tpu.dot_dimension_numbers<[1], [0], [0], [1], [0, 0, 1, 1], [], []>} : vector<1x32xf32>, vector<32x128xf32>, vector<1x128xf32> -> vector<1x128xf32>
    %350 = arith.addf %349, %10 : vector<1x128xf32>
    %c7_96 = arith.constant 7 : index
    %c0_97 = arith.constant 0 : index
    %351 = vector.load %arg9[%c7_96, %c0_97] : memref<8x128xf32, #tpu.memory_space<vmem>>, vector<1x128xf32>
    tpu.vector_store %arg9[%c7_96, %c0_97], %350 {strides = array<i32>} : memref<8x128xf32, #tpu.memory_space<vmem>>, vector<1x128xf32>,
    %c0_98 = arith.constant 0 : index
    %c0_99 = arith.constant 0 : index
    %352 = vector.load %arg10[%c0_98, %c0_99] : memref<1x128xf32, #tpu.memory_space<vmem>>, vector<1x32xf32>
    tpu.vector_store %arg10[%c0_98, %c0_99], %329 {strides = array<i32>} : memref<1x128xf32, #tpu.memory_space<vmem>>, vector<1x32xf32>,
    %c0_100 = arith.constant 0 : index
    %c32 = arith.constant 32 : index
    %353 = vector.load %arg10[%c0_100, %c32] : memref<1x128xf32, #tpu.memory_space<vmem>>, vector<1x32xf32>
    tpu.vector_store %arg10[%c0_100, %c32], %327 {strides = array<i32>} : memref<1x128xf32, #tpu.memory_space<vmem>>, vector<1x32xf32>,
    %c0_101 = arith.constant 0 : index
    %c64 = arith.constant 64 : index
    %354 = vector.load %arg10[%c0_101, %c64] : memref<1x128xf32, #tpu.memory_space<vmem>>, vector<1x32xf32>
    tpu.vector_store %arg10[%c0_101, %c64], %348 {strides = array<i32>} : memref<1x128xf32, #tpu.memory_space<vmem>>, vector<1x32xf32>,
    %c0_102 = arith.constant 0 : index
    %c96 = arith.constant 96 : index
    %355 = vector.load %arg10[%c0_102, %c96] : memref<1x128xf32, #tpu.memory_space<vmem>>, vector<1x32xf32>
    tpu.vector_store %arg10[%c0_102, %c96], %346 {strides = array<i32>} : memref<1x128xf32, #tpu.memory_space<vmem>>, vector<1x32xf32>,
    return
  }
  func.func @transform_0(%arg0: i32) -> (i32, i32) {
    %c0_i32 = arith.constant 0 : i32
    %c0_i32_0 = arith.constant 0 : i32
    return %arg0, %c0_i32 : i32, i32
  }
  func.func @transform_1(%arg0: i32) -> (i32, i32) {
    %c0_i32 = arith.constant 0 : i32
    %c0_i32_0 = arith.constant 0 : i32
    %c0_i32_1 = arith.constant 0 : i32
    return %c0_i32, %c0_i32_0 : i32, i32
  }
  func.func @transform_2(%arg0: i32) -> (i32, i32) {
    %c0_i32 = arith.constant 0 : i32
    %c0_i32_0 = arith.constant 0 : i32
    %c0_i32_1 = arith.constant 0 : i32
    return %c0_i32, %c0_i32_0 : i32, i32
  }
  func.func @transform_3(%arg0: i32) -> (i32, i32) {
    %c0_i32 = arith.constant 0 : i32
    %c0_i32_0 = arith.constant 0 : i32
    %c0_i32_1 = arith.constant 0 : i32
    return %c0_i32, %c0_i32_0 : i32, i32
  }
  func.func @transform_4(%arg0: i32) -> (i32, i32) {
    %c0_i32 = arith.constant 0 : i32
    %c0_i32_0 = arith.constant 0 : i32
    %c0_i32_1 = arith.constant 0 : i32
    return %c0_i32, %c0_i32_0 : i32, i32
  }
  func.func @transform_5(%arg0: i32) -> (i32, i32) {
    %c0_i32 = arith.constant 0 : i32
    %c0_i32_0 = arith.constant 0 : i32
    %c0_i32_1 = arith.constant 0 : i32
    return %c0_i32, %c0_i32_0 : i32, i32
  }
  func.func @transform_6(%arg0: i32) -> (i32, i32) {
    %c0_i32 = arith.constant 0 : i32
    %c0_i32_0 = arith.constant 0 : i32
    %c0_i32_1 = arith.constant 0 : i32
    return %c0_i32, %c0_i32_0 : i32, i32
  }
  func.func @transform_7(%arg0: i32) -> (i32, i32) {
    %c0_i32 = arith.constant 0 : i32
    %c0_i32_0 = arith.constant 0 : i32
    %c0_i32_1 = arith.constant 0 : i32
    return %c0_i32, %c0_i32_0 : i32, i32
  }
  func.func @transform_8(%arg0: i32) -> (i32, i32) {
    %c0_i32 = arith.constant 0 : i32
    %c0_i32_0 = arith.constant 0 : i32
    return %arg0, %c0_i32 : i32, i32
  }
  func.func @transform_9(%arg0: i32) -> (i32, i32) {
    %c0_i32 = arith.constant 0 : i32
    %c0_i32_0 = arith.constant 0 : i32
    %c0_i32_1 = arith.constant 0 : i32
    return %c0_i32, %c0_i32_0 : i32, i32
  }
}

</mosaic_0001>

<bundles_post_ra>
// kernel: tpu_custom_call.1
= control target key start
LH: loop header
LB: loop body
LE: loop exit
PB: predicated region body
PF: predicated region fallthrough
CT: control target
= control target key end

     0   :  { %15 = vsyncpa [#allocation3], 0  ;;  %s2747_s0 = inlined_call_operand.hbm [shape: f32[8,16], index: 0, kind: input, shape index: {}]   ;;  %s2748_s1 = inlined_call_operand.hbm [shape: f32[1,128], index: 1, kind: input, shape index: {}, may-alias: {1,9}]   ;;  %s2749_s2 = inlined_call_operand.hbm [shape: f32[16,128], index: 2, kind: input, shape index: {}]   ;;  %s2750_s3 = inlined_call_operand.hbm [shape: f32[32,128], index: 3, kind: input, shape index: {}]   ;;  %s2751_s4 = inlined_call_operand.hbm [shape: f32[32,128], index: 4, kind: input, shape index: {}]   ;;  %s2752_s5 = inlined_call_operand.hbm [shape: f32[32,128], index: 5, kind: input, shape index: {}]   ;;  %s2753_s6 = inlined_call_operand.hbm [shape: f32[32,128], index: 6, kind: input, shape index: {}]   ;;  %s2754_s7 = inlined_call_operand.hbm [shape: f32[3,128], index: 7, kind: input, shape index: {}]   ;;  %s2755_s8 = inlined_call_operand.hbm [shape: f32[8,128], index: 8, kind: output, shape index: {0}]   ;;  %s2756_s9 = inlined_call_operand.hbm [shape: f32[1,128], index: 9, kind: output, shape index: {1}, may-alias: {1,9}]  }
   0x1   :  { %16 = vsyncpa [#allocation6], 0 }
   0x2   :  { %17 = vsyncpa [#allocation9], 0 }
   0x3   :  { %18 = vsyncpa [#allocation12], 0 }
   0x4   :  { %19 = vsyncpa [#allocation15], 0 }
   0x5   :  { %20 = vsyncpa [#allocation4], 0  ;;  %s38_s11 = sshll.u32 %s2748_s1, 4  ;;  %s39_s11 = int_to_ptr.hbm [resolvable:$true] %s38_s11 }
   0x6   :  { %21 = vsyncpa [#allocation18], 0  ;;  %s2243_s12 = smov [#allocation5]   ;;  %s61_s16 = sshll.u32 %s2750_s3, 4  ;;  %s62_s16 = int_to_ptr.hbm [resolvable:$true] %s61_s16 }
   0x7   :  { %s40_s13 = sshll.u32 %s2243_s12, 4  ;;  %s2244_s17 = smov [#allocation8]   ;;  %s41_s13 = int_to_ptr.vmem [resolvable:$true] %s40_s13 }
   0x8   :  { %43 = dma.hbm_to_vmem [thread:$0]  %s39_s11, 16, %s41_s13, [#allocation6]  }
   0x9   :  { %s63_s18 = sshll.u32 %s2244_s17, 4  ;;  %s87_s21 = sshll.u32 %s2752_s5, 4  ;;  %s64_s18 = int_to_ptr.vmem [resolvable:$true] %s63_s18  ;;  %s88_s21 = int_to_ptr.hbm [resolvable:$true] %s87_s21 }
   0xa   :  { %s2245_s1 = smov 128   ;;  %s2246_s22 = smov 8  }
   0xb   :  { %69 = dma.hbm_to_vmem [thread:$0]  %s62_s16, 512, %s64_s18, [#allocation9], %s2245_s1, %s2245_s1, %s2246_s22  }
   0xc   :  { %s27_s25 = sshll.u32 %s2747_s0, 4  ;;  %s2247_s3 = smov [#allocation11]   ;;  %s28_s25 = int_to_ptr.hbm [resolvable:$true] %s27_s25 }
   0xd   :  { %s89_s26 = sshll.u32 %s2247_s3, 4  ;;  %s2248_s5 = smov [#allocation2]   ;;  %s90_s26 = int_to_ptr.vmem [resolvable:$true] %s89_s26 }
   0xe   :  { %95 = dma.hbm_to_vmem [thread:$0]  %s88_s21, 512, %s90_s26, [#allocation12], %s2245_s1, %s2245_s1, %s2246_s22  }
   0xf   :  { %s29_s27 = sshll.u32 %s2248_s5, 4  ;;  %s48_s30 = sshll.u32 %s2749_s2, 4  ;;  %s30_s27 = int_to_ptr.vmem [resolvable:$true] %s29_s27  ;;  %s49_s30 = int_to_ptr.hbm [resolvable:$true] %s48_s30 }
  0x10   :  { %32 = dma.hbm_to_vmem [thread:$0]  %s28_s25, 128, %s30_s27, [#allocation3]  }
  0x11   :  { %s74_s0 = sshll.u32 %s2751_s4, 4  ;;  %s2249_s12 = smov [#allocation7]   ;;  %s75_s0 = int_to_ptr.hbm [resolvable:$true] %s74_s0 }
  0x12   :  { %s50_s13 = sshll.u32 %s2249_s12, 4  ;;  %s2250_s14 = smov [#allocation10]   ;;  %s51_s13 = int_to_ptr.vmem [resolvable:$true] %s50_s13 }
  0x13   :  { %56 = dma.hbm_to_vmem [thread:$0]  %s49_s30, 256, %s51_s13, [#allocation6], %s2245_s1, %s2245_s1, %s2246_s22  }
  0x14   :  { %s76_s15 = sshll.u32 %s2250_s14, 4  ;;  %s100_s2 = sshll.u32 %s2753_s6, 4  ;;  %s77_s15 = int_to_ptr.vmem [resolvable:$true] %s76_s15  ;;  %s101_s2 = int_to_ptr.hbm [resolvable:$true] %s100_s2 }
  0x15   :  { %82 = dma.hbm_to_vmem [thread:$0]  %s75_s0, 512, %s77_s15, [#allocation9], %s2245_s1, %s2245_s1, %s2246_s22  }
  0x16   :  { %s114_s19 = sshll.u32 %s2754_s7, 4  ;;  %s2251_s20 = smov [#allocation13]   ;;  %s115_s19 = int_to_ptr.hbm [resolvable:$true] %s114_s19 }
  0x17   :  { %s102_s21 = sshll.u32 %s2251_s20, 4  ;;  %s2252_s23 = smov [#allocation14]   ;;  %s103_s21 = int_to_ptr.vmem [resolvable:$true] %s102_s21 }
  0x18   :  { %108 = dma.hbm_to_vmem [thread:$0]  %s101_s2, 512, %s103_s21, [#allocation12], %s2245_s1, %s2245_s1, %s2246_s22  }
  0x19   :  { %s116_s6 = sshll.u32 %s2252_s23, 4  ;;  %s117_s6 = int_to_ptr.vmem [resolvable:$true] %s116_s6 }
  0x1a   :  { %119 = dma.hbm_to_vmem [thread:$0]  %s115_s19, 64, %s117_s6, [#allocation15]  }
  0x1b   :  { %2229 = dma.done.wait [#allocation3], 128  }
  0x1c   :  { %2230 = vsyncadd [#allocation3], 4294967168 }
  0x1d   :  { %2231 = dma.done.wait [#allocation6], 272  }
  0x1e   :  { %2232 = vsyncadd [#allocation6], 4294967024 }
  0x1f   :  { %2233 = dma.done.wait [#allocation9], 1024  }
  0x20   :  { %2234 = vsyncadd [#allocation9], 4294966272 }
  0x21   :  { %2235 = dma.done.wait [#allocation12], 1024  }
  0x22   :  { %2236 = vsyncadd [#allocation12], 4294966272 }
  0x23   :  { %2237 = dma.done.wait [#allocation15], 64  }
  0x24   :  { %2238 = vsyncadd [#allocation15], 4294967232  ;;  %v2347_v0 = vld [vmem:[#allocation8 + $0x18] sm:$0xff]  ;;  %v2349_v1 = vld [vmem:[#allocation8 + $0x10] sm:$0xff]  ;;  %vm205_vm0 = vcmask 130048   ;;  %vm181_vm1 = vcmask 261120  }
  0x25   :  { %197 = vmatpush.msra.mxu0 %v2347_v0  ;;  %v2352_v2 = vld [vmem:[#allocation7 + $0x8] sm:$0xff]  ;;  %v2354_v3 = vld [vmem:[#allocation7] sm:$0xff]  ;;  %v2356_v4 = vld [vmem:[#allocation8 + $0x8] sm:$0xff]  ;;  %s2253_s7 = smov 64   ;;  %s2254_s1 = smov 32  }
  0x26   :  { %223 = vmatpush.msra.mxu1 %v2352_v2  ;;  %v156_v5 = vld [vmem:[#allocation5] sm:$0x1]  ;;  %v180_v6 = vld [vmem:[#allocation2] sm:$0x1]  ;;  %v2371_v11 = vld [vmem:[#allocation14] sm:$0x1] }
  0x27   :  { %198 = vmatpush.msra.mxu0 %v2349_v1  ;;  %157 = vst [vmem:[#allocation17] sm:$0x1] %v156_v5  ;;  %v2360_v7 = vld [vmem:[#allocation8] sm:$0xff]  ;;  %v2381_v35 = vld [vmem:[#allocation11 + $0x18] sm:$0xff]  ;;  %v2383_v36 = vld [vmem:[#allocation11 + $0x10] sm:$0xff]  ;;  %s2255_s22 = smov 96  }
  0x28   :  { %224 = vmatpush.msra.mxu1 %v2354_v3  ;;  %284 = vmatpush.msra.mxu2 %v2381_v35  ;;  %v2386_v37 = vld [vmem:[#allocation11 + $0x8] sm:$0xff]  ;;  %v2389_v38 = vld [vmem:[#allocation11] sm:$0xff]  ;;  %v2392_v39 = vld [vmem:[#allocation10 + $0x18] sm:$0xff]  ;;  %s2256_s24 = smov [#allocation17]   ;;  %s1753_s5 = sshll.u32 %s2756_s9, 4  ;;  %s1754_s5 = int_to_ptr.hbm [resolvable:$true] %s1753_s5 }
  0x29   :  { %199 = vmatpush.msra.mxu0 %v2356_v4  ;;  %1773 = vmatmul.msk.f32.vlgmr.msra.gmra.mxu1 %vm205_vm0, %v180_v6  ;;  %v2398_v40 = vld [vmem:[#allocation10 + $0x10] sm:$0xff]  ;;  %v2400_v41 = vld [vmem:[#allocation10 + $0x8] sm:$0xff]  ;;  %v2403_v42 = vld [vmem:[#allocation10] sm:$0xff]  ;;  %s1751_s25 = sshll.u32 %s2256_s24, 4  ;;  %s2257_s27 = smov [#allocation16]   ;;  %s1752_s25 = int_to_ptr.vmem [resolvable:$true] %s1751_s25 }
  0x2a   :  { %285 = vmatpush.msra.mxu2 %v2383_v36  ;;  %309 = vmatpush.msra.mxu3 %v2392_v39  ;;  %v382_v46 = vld [vmem:[#allocation2 + $0x1] sm:$0x1]  ;;  %v2426_v53 = vld [vmem:[#allocation14 + $0x1] sm:$0x1]  ;;  %s1740_s28 = sshll.u32 %s2257_s27, 4  ;;  %s1742_s10 = sshll.u32 %s2755_s8, 4  ;;  %s1741_s28 = int_to_ptr.vmem [resolvable:$true] %s1740_s28  ;;  %s1743_s10 = int_to_ptr.hbm [resolvable:$true] %s1742_s10 }
  0x2b   :  { %200 = vmatpush.msra.mxu0 %v2360_v7 }
  0x2c   :  { %286 = vmatpush.msra.mxu2 %v2386_v37  ;;  %310 = vmatpush.msra.mxu3 %v2398_v40 }
  0x2d   :  { %395 = vmatpush.msrb.mxu0 %v2347_v0 }
  0x2e   :  { %v179_v8 = vld [vmem:[#allocation17] sm:$0x1]  ;;  %287 = vmatpush.msra.mxu2 %v2389_v38  ;;  %311 = vmatpush.msra.mxu3 %v2400_v41 }
  0x2f   :  { %396 = vmatpush.msrb.mxu0 %v2349_v1  ;;  %v1843_v34 = vld [vmem:[#allocation17] ss:$0 sm:$0xff] }
  0x30   :  { %1772 = vmatmul.msk.f32.vlgmr.msra.gmra.mxu0 %vm181_vm1, %v179_v8  ;;  %420 = vmatpush.msrb.mxu2 %v2352_v2 }
  0x31   :  { %397 = vmatpush.msrb.mxu0 %v2356_v4  ;;  %312 = vmatpush.msra.mxu3 %v2403_v42 }
  0x32   :  { %421 = vmatpush.msrb.mxu2 %v2354_v3 }
  0x33   :  { %398 = vmatpush.msrb.mxu0 %v2360_v7  ;;  %476 = vmatpush.msrb.mxu3 %v2381_v35 }
  0x35   :  { %477 = vmatpush.msrb.mxu3 %v2383_v36 }
  0x37   :  { %478 = vmatpush.msrb.mxu3 %v2386_v37 }
  0x39   :  { %479 = vmatpush.msrb.mxu3 %v2389_v38 }
  0xa6   :  { %v226_v9 = vpop.f32.mrf.mxu1 }
  0xad   :  { %v202_v10 = vpop.f32.mrf.mxu0 }
  0xae   :  { %v227_v12 = vadd.f32 %v226_v9, %v202_v10 }
  0xb0   :  { %v229_v13 = vadd.f32 %v227_v12, %v2371_v11 }
  0xb2   :  { %1844 = vtanh.f32 %v229_v13  ;;  %v1774_v15 = vmul.f32 -1.442695, %v229_v13 }
  0xb4   :  { %1846 = vpow2.f32 %v1774_v15 }
  0xb8   :  { %v1845_v14 = vpop.eup %1844 }
  0xb9   :  { %252 = vrot.lane.b32.xlu0 %v1845_v14, %s2253_s7 }
  0xba   :  { %v1847_v16 = vpop.eup %1846 }
  0xbb   :  { %v233_v17 = vadd.f32 1.0, %v1847_v16 }
  0xbd   :  { %1848 = vrcp.f32 %v233_v17  ;;  %v245_v23 = vand.u32 2147483648, %v233_v17  ;;  %vm239_vm3 = vweird.f32 %v233_v17  ;;  %v243_v24 = vand.u32 2147483647, %v233_v17 }
  0xbf   :  { %v246_v26 = vor.u32 1.1754944e-38, %v245_v23  ;;  %vm244_vm5 = vcmp.eq.f32.partialorder %v243_v24, 8.507059e+37 }
  0xc3   :  { %v1849_v18 = vpop.eup %1848 }
  0xc4   :  { %v235_v19 = vmul.f32 %v1849_v18, %v233_v17  ;;  %vm240_vm2 = vweird.f32 %v1849_v18 }
  0xc5   :  { %vm241_vm4 = vmor %vm239_vm3, %vm240_vm2 }
  0xc6   :  { %v236_v20 = vsub.f32 1.0, %v235_v19 }
  0xc8   :  { %v237_v21 = vmul.f32 %v1849_v18, %v236_v20 }
  0xca   :  { %v238_v22 = vadd.f32 %v1849_v18, %v237_v21 }
  0xcc   :  { %v242_v25 = vsel %vm241_vm4, %v1849_v18, %v238_v22 }
  0xcd   :  { %v247_v28 = vsel %vm244_vm5, %v246_v26, %v242_v25 }
  0xce   :  { %v250_v30 = vmul.f32 %v247_v28, %v179_v8 }
 0x12b   :  { %v253_v27 = vpop.permute.xlu0 %252 }
 0x12c   :  { %v255_v29 = vmul.f32 %v253_v27, %v247_v28 }
 0x12e   :  { %257 = vrot.lane.b32.xlu0 %v255_v29, %s2254_s1 }
 0x1a0   :  { %v258_v31 = vpop.permute.xlu0 %257 }
 0x1a1   :  { %v2376_v32 = vadd.f32 %v258_v31, %v250_v30 }
 0x1a3   :  { %1850 = vtanh.f32 %v2376_v32 }
 0x1a9   :  { %v1851_v33 = vpop.eup %1850 }
 0x1aa   :  { %263 = vrot.lane.b32.xlu1 %v1851_v33, %s2253_s7 }
 0x1b2   :  { %268 = vrot.lane.b32.xlu1 %v1843_v34, %s2253_s7 }
 0x21c   :  { %v264_v43 = vpop.permute.xlu1 %263 }
 0x21d   :  { %v266_v44 = vmul.f32 %v264_v43, %v247_v28 }
 0x21f   :  { %293 = vrot.lane.b32.xlu2 %v266_v44, %s2254_s1 }
 0x224   :  { %v2412_v45 = vpop.permute.xlu1 %268 }
 0x225   :  { %1775 = vmatmul.msk.f32.vlgmr.msra.gmra.mxu2 %vm181_vm1, %v2412_v45 }
 0x226   :  { %586 = vmatpush.msra.mxu2 %v2347_v0 }
 0x228   :  { %587 = vmatpush.msra.mxu2 %v2349_v1 }
 0x22a   :  { %588 = vmatpush.msra.mxu2 %v2356_v4 }
 0x22c   :  { %589 = vmatpush.msra.mxu2 %v2360_v7 }
 0x22d   :  { %1780 = vmatmul.msk.f32.vlgmr.msrb.gmra.mxu2 %vm205_vm0, %v382_v46 }
 0x279   :  { %v294_v47 = vpop.permute.xlu2 %293 }
 0x27a   :  { %1776 = vmatmul.msk.f32.vlgmr.msra.gmra.mxu3 %vm181_vm1, %v294_v47  ;;  %1779 = vmatmul.msk.f32.vlgmr.msrb.gmra.mxu0 %vm181_vm1, %v294_v47 }
 0x27b   :  { %611 = vmatpush.msra.mxu3 %v2352_v2 }
 0x27d   :  { %612 = vmatpush.msra.mxu3 %v2354_v3 }
 0x2a8   :  { %v289_v48 = vpop.f32.mrf.mxu2 }
 0x2b0   :  { %v423_v49 = vpop.f32.mrf.mxu2 }
 0x2f7   :  { %v400_v50 = vpop.f32.mrf.mxu0 }
 0x2f8   :  { %v424_v51 = vadd.f32 %v423_v49, %v400_v50  ;;  %v2443_v50 = vld [vmem:[#allocation13 + $0x18] sm:$0xff] }
 0x2f9   :  { %373 = vmatpush.msrb.mxu1 %v2443_v50  ;;  %564 = vmatpush.msra.mxu0 %v2443_v50 }
 0x2fa   :  { %v426_v52 = vadd.f32 %v424_v51, %v2371_v11  ;;  %755 = vmatpush.msrb.mxu2 %v2443_v50  ;;  %v2454_v51 = vld [vmem:[#allocation13] sm:$0xff] }
 0x2fc   :  { %1852 = vtanh.f32 %v426_v52  ;;  %v1781_v62 = vmul.f32 -1.442695, %v426_v52 }
 0x2fd   :  { %v314_v54 = vpop.f32.mrf.mxu3 }
 0x2fe   :  { %v315_v55 = vadd.f32 %v314_v54, %v289_v48 }
 0x300   :  { %v317_v56 = vadd.f32 %v315_v55, %v2426_v53 }
 0x302   :  { %v1853_v57 = vpop.eup %1852  ;;  %1854 = vtanh.f32 %v317_v56  ;;  %v1777_v59 = vmul.f32 -1.442695, %v317_v56 }
 0x303   :  { %449 = vrot.lane.b32.xlu0 %v1853_v57, %s2253_s7 }
 0x304   :  { %1856 = vpow2.f32 %v1777_v59 }
 0x308   :  { %v1855_v58 = vpop.eup %1854 }
 0x309   :  { %341 = vrot.lane.b32.xlu2 %v1855_v58, %s2253_s7  ;;  %v573_v58 = vld [vmem:[#allocation2 + $0x2] sm:$0x1] }
 0x30a   :  { %v1857_v60 = vpop.eup %1856 }
 0x30b   :  { %v321_v61 = vadd.f32 1.0, %v1857_v60  ;;  %v2496_v60 = vld [vmem:[#allocation14 + $0x2] sm:$0x1] }
 0x30d   :  { %1858 = vrcp.f32 %v321_v61  ;;  %v333_v13 = vand.u32 2147483648, %v321_v61  ;;  %vm327_vm7 = vweird.f32 %v321_v61  ;;  %v331_v14 = vand.u32 2147483647, %v321_v61 }
 0x30e   :  { %1860 = vpow2.f32 %v1781_v62 }
 0x30f   :  { %v334_v17 = vor.u32 1.1754944e-38, %v333_v13  ;;  %vm332_vm9 = vcmp.eq.f32.partialorder %v331_v14, 8.507059e+37 }
 0x313   :  { %v1859_v63 = vpop.eup %1858 }
 0x314   :  { %v323_v5 = vmul.f32 %v1859_v63, %v321_v61  ;;  %v1861_v6 = vpop.eup %1860  ;;  %vm328_vm6 = vweird.f32 %v1859_v63 }
 0x315   :  { %v430_v9 = vadd.f32 1.0, %v1861_v6  ;;  %vm329_vm8 = vmor %vm327_vm7, %vm328_vm6 }
 0x316   :  { %v324_v8 = vsub.f32 1.0, %v323_v5 }
 0x317   :  { %1862 = vrcp.f32 %v430_v9  ;;  %v442_v25 = vand.u32 2147483648, %v430_v9  ;;  %vm436_vm11 = vweird.f32 %v430_v9  ;;  %v440_v26 = vand.u32 2147483647, %v430_v9 }
 0x318   :  { %v325_v10 = vmul.f32 %v1859_v63, %v324_v8 }
 0x319   :  { %v443_v28 = vor.u32 1.1754944e-38, %v442_v25  ;;  %vm441_vm13 = vcmp.eq.f32.partialorder %v440_v26, 8.507059e+37 }
 0x31a   :  { %v326_v12 = vadd.f32 %v1859_v63, %v325_v10 }
 0x31c   :  { %v330_v16 = vsel %vm329_vm8, %v1859_v63, %v326_v12 }
 0x31d   :  { %v1863_v15 = vpop.eup %1862  ;;  %v335_v20 = vsel %vm332_vm9, %v334_v17, %v330_v16 }
 0x31e   :  { %v432_v18 = vmul.f32 %v1863_v15, %v430_v9  ;;  %vm437_vm10 = vweird.f32 %v1863_v15  ;;  %v339_v44 = vmul.f32 %v335_v20, %v2412_v45  ;;  %v2449_v45 = vld [vmem:[#allocation13 + $0x8] sm:$0xff] }
 0x31f   :  { %vm438_vm12 = vmor %vm436_vm11, %vm437_vm10 }
 0x320   :  { %v433_v22 = vsub.f32 1.0, %v432_v18 }
 0x322   :  { %v434_v23 = vmul.f32 %v1863_v15, %v433_v22 }
 0x324   :  { %v435_v24 = vadd.f32 %v1863_v15, %v434_v23 }
 0x326   :  { %v439_v27 = vsel %vm438_vm12, %v1863_v15, %v435_v24 }
 0x327   :  { %v444_v30 = vsel %vm441_vm13, %v443_v28, %v439_v27 }
 0x328   :  { %v447_v33 = vmul.f32 %v444_v30, %v2376_v32  ;;  %v2445_v32 = vld [vmem:[#allocation13 + $0x10] sm:$0xff] }
 0x329   :  { %374 = vmatpush.msrb.mxu1 %v2445_v32  ;;  %565 = vmatpush.msra.mxu0 %v2445_v32 }
 0x32a   :  { %756 = vmatpush.msrb.mxu2 %v2445_v32 }
 0x32b   :  { %375 = vmatpush.msrb.mxu1 %v2449_v45  ;;  %566 = vmatpush.msra.mxu0 %v2449_v45 }
 0x32c   :  { %757 = vmatpush.msrb.mxu2 %v2449_v45 }
 0x32d   :  { %376 = vmatpush.msrb.mxu1 %v2454_v51  ;;  %567 = vmatpush.msra.mxu0 %v2454_v51 }
 0x32e   :  { %758 = vmatpush.msrb.mxu2 %v2454_v51 }
 0x32f   :  { %501 = vmatpush.msra.mxu1 %v2392_v39  ;;  %692 = vmatpush.msrb.mxu0 %v2392_v39 }
 0x331   :  { %502 = vmatpush.msra.mxu1 %v2398_v40  ;;  %693 = vmatpush.msrb.mxu0 %v2398_v40 }
 0x333   :  { %503 = vmatpush.msra.mxu1 %v2400_v41  ;;  %694 = vmatpush.msrb.mxu0 %v2400_v41 }
 0x335   :  { %504 = vmatpush.msra.mxu1 %v2403_v42  ;;  %695 = vmatpush.msrb.mxu0 %v2403_v42 }
 0x363   :  { %v342_v19 = vpop.permute.xlu2 %341 }
 0x364   :  { %v344_v21 = vmul.f32 %v342_v19, %v335_v20 }
 0x366   :  { %346 = vrot.lane.b32.xlu1 %v344_v21, %s2254_s1 }
 0x375   :  { %v450_v29 = vpop.permute.xlu0 %449 }
 0x376   :  { %v452_v31 = vmul.f32 %v450_v29, %v444_v30 }
 0x378   :  { %454 = vrot.lane.b32.xlu2 %v452_v31, %s2254_s1 }
 0x3d2   :  { %v455_v34 = vpop.permute.xlu2 %454 }
 0x3d3   :  { %v2434_v43 = vadd.f32 %v455_v34, %v447_v33 }
 0x3d5   :  { %1864 = vtanh.f32 %v2434_v43 }
 0x3d8   :  { %v347_v46 = vpop.permute.xlu1 %346 }
 0x3d9   :  { %v2438_v47 = vadd.f32 %v347_v46, %v339_v44 }
 0x3db   :  { %v1865_v48 = vpop.eup %1864  ;;  %1866 = vtanh.f32 %v2438_v47 }
 0x3dc   :  { %460 = vrot.lane.b32.xlu1 %v1865_v48, %s2253_s7 }
 0x3e1   :  { %v1867_v49 = vpop.eup %1866 }
 0x3e2   :  { %352 = vrot.lane.b32.xlu0 %v1867_v49, %s2253_s7 }
 0x44e   :  { %v461_v52 = vpop.permute.xlu1 %460 }
 0x44f   :  { %v463_v54 = vmul.f32 %v461_v52, %v444_v30 }
 0x451   :  { %485 = vrot.lane.b32.xlu0 %v463_v54, %s2254_s1 }
 0x454   :  { %v353_v55 = vpop.permute.xlu0 %352 }
 0x455   :  { %v355_v56 = vmul.f32 %v353_v55, %v335_v20 }
 0x457   :  { %357 = vrot.lane.b32.xlu2 %v355_v56, %s2254_s1 }
 0x4b1   :  { %v358_v57 = vpop.permute.xlu2 %357 }
 0x4b2   :  { %1778 = vmatmul.msk.f32.vlgmr.msrb.gmra.mxu1 %vm181_vm1, %v358_v57  ;;  %1782 = vmatmul.msk.f32.vlgmr.msrb.gmra.mxu3 %vm181_vm1, %v358_v57 }
 0x4b3   :  { %777 = vmatpush.msrb.mxu3 %v2347_v0  ;;  %667 = vmatpush.msrb.mxu1 %v2381_v35 }
 0x4b5   :  { %778 = vmatpush.msrb.mxu3 %v2349_v1  ;;  %668 = vmatpush.msrb.mxu1 %v2383_v36 }
 0x4b7   :  { %779 = vmatpush.msrb.mxu3 %v2356_v4  ;;  %669 = vmatpush.msrb.mxu1 %v2386_v37 }
 0x4b9   :  { %780 = vmatpush.msrb.mxu3 %v2360_v7  ;;  %670 = vmatpush.msrb.mxu1 %v2389_v38 }
 0x4ba   :  { %1787 = vmatmul.msk.f32.vlgmr.msra.gmra.mxu3 %vm205_vm0, %v573_v58 }
 0x4bb   :  { %946 = vmatpush.msra.mxu3 %v2443_v50 }
 0x4bd   :  { %947 = vmatpush.msra.mxu3 %v2445_v32 }
 0x4bf   :  { %948 = vmatpush.msra.mxu3 %v2449_v45 }
 0x4c1   :  { %949 = vmatpush.msra.mxu3 %v2454_v51 }
 0x4c3   :  { %v486_v59 = vpop.permute.xlu0 %485 }
 0x4c4   :  { %1783 = vmatmul.msk.f32.vlgmr.msra.gmra.mxu1 %vm181_vm1, %v486_v59  ;;  %1786 = vmatmul.msk.f32.vlgmr.msra.gmra.mxu2 %vm181_vm1, %v486_v59 }
 0x4c5   :  { %802 = vmatpush.msra.mxu1 %v2352_v2  ;;  %883 = vmatpush.msra.mxu2 %v2392_v39 }
 0x4c7   :  { %803 = vmatpush.msra.mxu1 %v2354_v3  ;;  %884 = vmatpush.msra.mxu2 %v2398_v40 }
 0x4c9   :  { %885 = vmatpush.msra.mxu2 %v2400_v41 }
 0x4cb   :  { %886 = vmatpush.msra.mxu2 %v2403_v42 }
 0x52f   :  { %v378_v61 = vpop.f32.mrf.mxu1 }
 0x530   :  { %v379_v62 = vadd.f32 %v378_v61, %v2496_v60 }
 0x532   :  { %381 = vst [vmem:[#allocation16] sm:$0x1] %v379_v62 }
 0x535   :  { %v481_v63 = vpop.f32.mrf.mxu3 }
 0x53d   :  { %v614_v9 = vpop.f32.mrf.mxu3 }
 0x541   :  { %v506_v5 = vpop.f32.mrf.mxu1 }
 0x542   :  { %v507_v6 = vadd.f32 %v506_v5, %v481_v63 }
 0x544   :  { %v509_v8 = vadd.f32 %v507_v6, %v2426_v53 }
 0x546   :  { %1868 = vtanh.f32 %v509_v8  ;;  %v1784_v19 = vmul.f32 -1.442695, %v509_v8 }
 0x547   :  { %v591_v10 = vpop.f32.mrf.mxu2 }
 0x548   :  { %v615_v12 = vadd.f32 %v614_v9, %v591_v10 }
 0x54a   :  { %v617_v13 = vadd.f32 %v615_v12, %v2371_v11 }
 0x54c   :  { %v1869_v14 = vpop.eup %1868  ;;  %1870 = vtanh.f32 %v617_v13  ;;  %v1788_v16 = vmul.f32 -1.442695, %v617_v13 }
 0x54d   :  { %532 = vrot.lane.b32.xlu1 %v1869_v14, %s2253_s7 }
 0x54e   :  { %1872 = vpow2.f32 %v1788_v16 }
 0x552   :  { %v1871_v15 = vpop.eup %1870 }
 0x553   :  { %640 = vrot.lane.b32.xlu2 %v1871_v15, %s2253_s7 }
 0x554   :  { %v1873_v17 = vpop.eup %1872 }
 0x555   :  { %v621_v18 = vadd.f32 1.0, %v1873_v17  ;;  %v764_v17 = vld [vmem:[#allocation2 + $0x3] sm:$0x1] }
 0x557   :  { %1874 = vrcp.f32 %v621_v18  ;;  %v633_v27 = vand.u32 2147483648, %v621_v18  ;;  %vm627_vm15 = vweird.f32 %v621_v18  ;;  %v631_v28 = vand.u32 2147483647, %v621_v18 }
 0x558   :  { %1876 = vpow2.f32 %v1784_v19 }
 0x559   :  { %v634_v31 = vor.u32 1.1754944e-38, %v633_v27  ;;  %vm632_vm3 = vcmp.eq.f32.partialorder %v631_v28, 8.507059e+37 }
 0x55d   :  { %v1875_v20 = vpop.eup %1874 }
 0x55e   :  { %v623_v21 = vmul.f32 %v1875_v20, %v621_v18  ;;  %v1877_v22 = vpop.eup %1876  ;;  %vm628_vm14 = vweird.f32 %v1875_v20 }
 0x55f   :  { %v513_v24 = vadd.f32 1.0, %v1877_v22  ;;  %vm629_vm2 = vmor %vm627_vm15, %vm628_vm14 }
 0x560   :  { %v624_v23 = vsub.f32 1.0, %v623_v21 }
 0x561   :  { %1878 = vrcp.f32 %v513_v24  ;;  %v525_v54 = vand.u32 2147483648, %v513_v24  ;;  %vm519_vm5 = vweird.f32 %v513_v24  ;;  %v523_v55 = vand.u32 2147483647, %v513_v24 }
 0x562   :  { %v625_v25 = vmul.f32 %v1875_v20, %v624_v23 }
 0x563   :  { %v526_v57 = vor.u32 1.1754944e-38, %v525_v54  ;;  %vm524_vm7 = vcmp.eq.f32.partialorder %v523_v55, 8.507059e+37 }
 0x564   :  { %v626_v26 = vadd.f32 %v1875_v20, %v625_v25 }
 0x566   :  { %v630_v30 = vsel %vm629_vm2, %v1875_v20, %v626_v26 }
 0x567   :  { %v1879_v29 = vpop.eup %1878  ;;  %v635_v44 = vsel %vm632_vm3, %v634_v31, %v630_v30 }
 0x568   :  { %v515_v33 = vmul.f32 %v1879_v29, %v513_v24  ;;  %vm520_vm4 = vweird.f32 %v1879_v29  ;;  %v638_v62 = vmul.f32 %v635_v44, %v2434_v43 }
 0x569   :  { %vm521_vm6 = vmor %vm519_vm5, %vm520_vm4 }
 0x56a   :  { %v516_v48 = vsub.f32 1.0, %v515_v33 }
 0x56c   :  { %v517_v49 = vmul.f32 %v1879_v29, %v516_v48 }
 0x56e   :  { %v518_v52 = vadd.f32 %v1879_v29, %v517_v49 }
 0x570   :  { %v522_v56 = vsel %vm521_vm6, %v1879_v29, %v518_v52 }
 0x571   :  { %v527_v59 = vsel %vm524_vm7, %v526_v57, %v522_v56 }
 0x572   :  { %v530_v8 = vmul.f32 %v527_v59, %v2438_v47 }
 0x5ad   :  { %v641_v34 = vpop.permute.xlu2 %640 }
 0x5ae   :  { %v643_v46 = vmul.f32 %v641_v34, %v635_v44 }
 0x5b0   :  { %645 = vrot.lane.b32.xlu1 %v643_v46, %s2254_s1 }
 0x5bf   :  { %v533_v58 = vpop.permute.xlu1 %532 }
 0x5c0   :  { %v535_v61 = vmul.f32 %v533_v58, %v527_v59 }
 0x5c2   :  { %537 = vrot.lane.b32.xlu0 %v535_v61, %s2254_s1 }
 0x622   :  { %v646_v63 = vpop.permute.xlu1 %645 }
 0x623   :  { %v2506_v5 = vadd.f32 %v646_v63, %v638_v62 }
 0x625   :  { %1880 = vtanh.f32 %v2506_v5 }
 0x62b   :  { %v1881_v6 = vpop.eup %1880 }
 0x62c   :  { %651 = vrot.lane.b32.xlu0 %v1881_v6, %s2253_s7 }
 0x634   :  { %v538_v9 = vpop.permute.xlu0 %537 }
 0x635   :  { %v2511_v10 = vadd.f32 %v538_v9, %v530_v8 }
 0x637   :  { %1882 = vtanh.f32 %v2511_v10 }
 0x63d   :  { %v1883_v12 = vpop.eup %1882 }
 0x63e   :  { %543 = vrot.lane.b32.xlu2 %v1883_v12, %s2253_s7 }
 0x698   :  { %v544_v13 = vpop.permute.xlu2 %543 }
 0x699   :  { %v546_v43 = vmul.f32 %v544_v13, %v527_v59 }
 0x69b   :  { %548 = vrot.lane.b32.xlu1 %v546_v43, %s2254_s1 }
 0x69e   :  { %v652_v14 = vpop.permute.xlu0 %651 }
 0x69f   :  { %v654_v15 = vmul.f32 %v652_v14, %v635_v44 }
 0x6a1   :  { %676 = vrot.lane.b32.xlu2 %v654_v15, %s2254_s1 }
 0x6fb   :  { %v677_v16 = vpop.permute.xlu2 %676 }
 0x6fc   :  { %1793 = vmatmul.msk.f32.vlgmr.msrb.gmra.mxu3 %vm181_vm1, %v677_v16 }
 0x6fd   :  { %1074 = vmatpush.msrb.mxu3 %v2392_v39 }
 0x6ff   :  { %1075 = vmatpush.msrb.mxu3 %v2398_v40 }
 0x701   :  { %1076 = vmatpush.msrb.mxu3 %v2400_v41 }
 0x703   :  { %1077 = vmatpush.msrb.mxu3 %v2403_v42 }
 0x70d   :  { %v549_v47 = vpop.permute.xlu1 %548 }
 0x70e   :  { %1785 = vmatmul.msk.f32.vlgmr.msra.gmra.mxu0 %vm181_vm1, %v549_v47  ;;  %1789 = vmatmul.msk.f32.vlgmr.msrb.gmra.mxu1 %vm181_vm1, %v549_v47 }
 0x70f   :  { %858 = vmatpush.msra.mxu0 %v2381_v35  ;;  %968 = vmatpush.msrb.mxu1 %v2347_v0 }
 0x711   :  { %859 = vmatpush.msra.mxu0 %v2383_v36  ;;  %969 = vmatpush.msrb.mxu1 %v2349_v1 }
 0x713   :  { %860 = vmatpush.msra.mxu0 %v2386_v37  ;;  %970 = vmatpush.msrb.mxu1 %v2356_v4 }
 0x715   :  { %861 = vmatpush.msra.mxu0 %v2389_v38  ;;  %971 = vmatpush.msrb.mxu1 %v2360_v7 }
 0x716   :  { %1790 = vmatmul.msk.f32.vlgmr.msrb.gmra.mxu0 %vm181_vm1, %v677_v16  ;;  %1794 = vmatmul.msk.f32.vlgmr.msra.gmra.mxu1 %vm205_vm0, %v764_v17 }
 0x717   :  { %993 = vmatpush.msrb.mxu0 %v2352_v2  ;;  %1137 = vmatpush.msra.mxu1 %v2443_v50 }
 0x719   :  { %994 = vmatpush.msrb.mxu0 %v2354_v3  ;;  %1138 = vmatpush.msra.mxu1 %v2445_v32 }
 0x71b   :  { %1139 = vmatpush.msra.mxu1 %v2449_v45 }
 0x71d   :  { %1140 = vmatpush.msra.mxu1 %v2454_v51 }
 0x77f   :  { %v782_v21 = vpop.f32.mrf.mxu3 }
 0x78b   :  { %v569_v18 = vpop.f32.mrf.mxu0  ;;  %v672_v19 = vpop.f32.mrf.mxu1 }
 0x78c   :  { %v570_v20 = vadd.f32 %v569_v18, %v2496_v60 }
 0x78e   :  { %572 = vst [vmem:[#allocation16 + $0x1] sm:$0x1] %v570_v20 }
 0x793   :  { %v697_v22 = vpop.f32.mrf.mxu0  ;;  %v805_v23 = vpop.f32.mrf.mxu1 }
 0x794   :  { %v698_v24 = vadd.f32 %v697_v22, %v672_v19  ;;  %v806_v25 = vadd.f32 %v805_v23, %v782_v21 }
 0x796   :  { %v700_v26 = vadd.f32 %v698_v24, %v2426_v53  ;;  %v808_v27 = vadd.f32 %v806_v25, %v2371_v11 }
 0x798   :  { %1884 = vtanh.f32 %v700_v26  ;;  %v1791_v30 = vmul.f32 -1.442695, %v700_v26  ;;  %v1795_v31 = vmul.f32 -1.442695, %v808_v27 }
 0x799   :  { %1886 = vtanh.f32 %v808_v27 }
 0x79a   :  { %1888 = vpow2.f32 %v1791_v30 }
 0x79b   :  { %1890 = vpow2.f32 %v1795_v31 }
 0x79e   :  { %v1885_v28 = vpop.eup %1884 }
 0x79f   :  { %v1887_v29 = vpop.eup %1886  ;;  %723 = vrot.lane.b32.xlu0 %v1885_v28, %s2253_s7 }
 0x7a0   :  { %831 = vrot.lane.b32.xlu1 %v1887_v29, %s2253_s7  ;;  %v1889_v33 = vpop.eup %1888 }
 0x7a1   :  { %v1891_v34 = vpop.eup %1890  ;;  %v704_v44 = vadd.f32 1.0, %v1889_v33 }
 0x7a2   :  { %v812_v46 = vadd.f32 1.0, %v1891_v34 }
 0x7a3   :  { %1892 = vrcp.f32 %v704_v44  ;;  %v716_v62 = vand.u32 2147483648, %v704_v44  ;;  %vm710_vm10 = vweird.f32 %v704_v44  ;;  %v714_v6 = vand.u32 2147483647, %v704_v44 }
 0x7a4   :  { %1894 = vrcp.f32 %v812_v46  ;;  %v824_v63 = vand.u32 2147483648, %v812_v46  ;;  %vm818_vm11 = vweird.f32 %v812_v46  ;;  %v822_v8 = vand.u32 2147483647, %v812_v46 }
 0x7a5   :  { %v717_v13 = vor.u32 1.1754944e-38, %v716_v62  ;;  %vm715_vm14 = vcmp.eq.f32.partialorder %v714_v6, 8.507059e+37 }
 0x7a6   :  { %v825_v43 = vor.u32 1.1754944e-38, %v824_v63  ;;  %vm823_vm15 = vcmp.eq.f32.partialorder %v822_v8, 8.507059e+37 }
 0x7a9   :  { %v1893_v48 = vpop.eup %1892 }
 0x7aa   :  { %v1895_v49 = vpop.eup %1894  ;;  %v706_v52 = vmul.f32 %v1893_v48, %v704_v44  ;;  %vm711_vm8 = vweird.f32 %v1893_v48 }
 0x7ab   :  { %v814_v54 = vmul.f32 %v1895_v49, %v812_v46  ;;  %vm819_vm9 = vweird.f32 %v1895_v49  ;;  %vm712_vm12 = vmor %vm710_vm10, %vm711_vm8 }
 0x7ac   :  { %v707_v55 = vsub.f32 1.0, %v706_v52  ;;  %vm820_vm13 = vmor %vm818_vm11, %vm819_vm9 }
 0x7ad   :  { %v815_v56 = vsub.f32 1.0, %v814_v54 }
 0x7ae   :  { %v708_v57 = vmul.f32 %v1893_v48, %v707_v55 }
 0x7af   :  { %v816_v58 = vmul.f32 %v1895_v49, %v815_v56 }
 0x7b0   :  { %v709_v59 = vadd.f32 %v1893_v48, %v708_v57 }
 0x7b1   :  { %v817_v61 = vadd.f32 %v1895_v49, %v816_v58 }
 0x7b2   :  { %v713_v9 = vsel %vm712_vm12, %v1893_v48, %v709_v59 }
 0x7b3   :  { %v821_v12 = vsel %vm820_vm13, %v1895_v49, %v817_v61  ;;  %v718_v15 = vsel %vm715_vm14, %v717_v13, %v713_v9 }
 0x7b4   :  { %v826_v47 = vsel %vm823_vm15, %v825_v43, %v821_v12  ;;  %v721_v19 = vmul.f32 %v718_v15, %v2511_v10 }
 0x7b5   :  { %v829_v23 = vmul.f32 %v826_v47, %v2506_v5  ;;  %v955_v5 = vld [vmem:[#allocation2 + $0x4] sm:$0x1] }
 0x811   :  { %v724_v14 = vpop.permute.xlu0 %723 }
 0x812   :  { %v832_v16 = vpop.permute.xlu1 %831  ;;  %v726_v17 = vmul.f32 %v724_v14, %v718_v15 }
 0x813   :  { %v834_v18 = vmul.f32 %v832_v16, %v826_v47 }
 0x814   :  { %728 = vrot.lane.b32.xlu2 %v726_v17, %s2254_s1 }
 0x815   :  { %836 = vrot.lane.b32.xlu0 %v834_v18, %s2254_s1 }
 0x86e   :  { %v729_v20 = vpop.permute.xlu2 %728 }
 0x86f   :  { %v2548_v21 = vadd.f32 %v729_v20, %v721_v19 }
 0x871   :  { %1896 = vtanh.f32 %v2548_v21 }
 0x877   :  { %v1897_v22 = vpop.eup %1896 }
 0x878   :  { %734 = vrot.lane.b32.xlu1 %v1897_v22, %s2253_s7 }
 0x887   :  { %v837_v24 = vpop.permute.xlu0 %836 }
 0x888   :  { %v2553_v25 = vadd.f32 %v837_v24, %v829_v23 }
 0x88a   :  { %1898 = vtanh.f32 %v2553_v25 }
 0x890   :  { %v1899_v26 = vpop.eup %1898 }
 0x891   :  { %842 = vrot.lane.b32.xlu2 %v1899_v26, %s2253_s7 }
 0x8ea   :  { %v735_v27 = vpop.permute.xlu1 %734 }
 0x8eb   :  { %v843_v10 = vpop.permute.xlu2 %842  ;;  %v737_v28 = vmul.f32 %v735_v27, %v718_v15 }
 0x8ec   :  { %v845_v29 = vmul.f32 %v843_v10, %v826_v47 }
 0x8ed   :  { %739 = vrot.lane.b32.xlu0 %v737_v28, %s2254_s1 }
 0x8ee   :  { %867 = vrot.lane.b32.xlu1 %v845_v29, %s2254_s1 }
 0x95f   :  { %v740_v30 = vpop.permute.xlu0 %739 }
 0x960   :  { %v868_v31 = vpop.permute.xlu1 %867  ;;  %1792 = vmatmul.msk.f32.vlgmr.msrb.gmra.mxu2 %vm181_vm1, %v740_v30  ;;  %1796 = vmatmul.msk.f32.vlgmr.msra.gmra.mxu0 %vm181_vm1, %v740_v30 }
 0x961   :  { %1800 = vmatmul.msk.f32.vlgmr.msrb.gmra.mxu1 %vm181_vm1, %v868_v31  ;;  %1049 = vmatpush.msrb.mxu2 %v2381_v35 }
 0x962   :  { %1159 = vmatpush.msra.mxu0 %v2347_v0  ;;  %1265 = vmatpush.msrb.mxu1 %v2392_v39 }
 0x963   :  { %1050 = vmatpush.msrb.mxu2 %v2383_v36 }
 0x964   :  { %1160 = vmatpush.msra.mxu0 %v2349_v1  ;;  %1266 = vmatpush.msrb.mxu1 %v2398_v40 }
 0x965   :  { %1051 = vmatpush.msrb.mxu2 %v2386_v37 }
 0x966   :  { %1161 = vmatpush.msra.mxu0 %v2356_v4  ;;  %1267 = vmatpush.msrb.mxu1 %v2400_v41 }
 0x967   :  { %1052 = vmatpush.msrb.mxu2 %v2389_v38 }
 0x968   :  { %1797 = vmatmul.msk.f32.vlgmr.msra.gmra.mxu2 %vm181_vm1, %v868_v31  ;;  %1801 = vmatmul.msk.f32.vlgmr.msrb.gmra.mxu0 %vm205_vm0, %v955_v5 }
 0x969   :  { %1184 = vmatpush.msra.mxu2 %v2352_v2  ;;  %1162 = vmatpush.msra.mxu0 %v2360_v7 }
 0x96a   :  { %1268 = vmatpush.msrb.mxu1 %v2403_v42 }
 0x96b   :  { %1328 = vmatpush.msrb.mxu0 %v2443_v50  ;;  %1185 = vmatpush.msra.mxu2 %v2354_v3 }
 0x96d   :  { %1329 = vmatpush.msrb.mxu0 %v2445_v32 }
 0x96f   :  { %1330 = vmatpush.msrb.mxu0 %v2449_v45 }
 0x971   :  { %1331 = vmatpush.msrb.mxu0 %v2454_v51 }
 0x9dd   :  { %v863_v0 = vpop.f32.mrf.mxu0 }
 0x9de   :  { %v973_v33 = vpop.f32.mrf.mxu1 }
 0x9e3   :  { %v760_v1 = vpop.f32.mrf.mxu2 }
 0x9e4   :  { %v761_v4 = vadd.f32 %v760_v1, %v2496_v60 }
 0x9e5   :  { %v996_v2 = vpop.f32.mrf.mxu0 }
 0x9e6   :  { %763 = vst [vmem:[#allocation16 + $0x2] sm:$0x1] %v761_v4  ;;  %v997_v7 = vadd.f32 %v996_v2, %v973_v33 }
 0x9e8   :  { %v999_v34 = vadd.f32 %v997_v7, %v2371_v11  ;;  %v2603_v7 = vld [vmem:[#allocation8 + $0x18] sm:$0xff] }
 0x9ea   :  { %1900 = vtanh.f32 %v999_v34  ;;  %v1802_v56 = vmul.f32 -1.442695, %v999_v34  ;;  %v2607_v34 = vld [vmem:[#allocation8 + $0x10] sm:$0xff] }
 0x9eb   :  { %v888_v44 = vpop.f32.mrf.mxu2 }
 0x9ec   :  { %v889_v46 = vadd.f32 %v888_v44, %v863_v0  ;;  %v1146_v44 = vld [vmem:[#allocation2 + $0x5] sm:$0x1] }
 0x9ee   :  { %v891_v3 = vadd.f32 %v889_v46, %v2426_v53  ;;  %v2611_v46 = vld [vmem:[#allocation8 + $0x8] sm:$0xff] }
 0x9f0   :  { %v1901_v48 = vpop.eup %1900  ;;  %1902 = vtanh.f32 %v891_v3  ;;  %v1798_v52 = vmul.f32 -1.442695, %v891_v3  ;;  %v2615_v3 = vld [vmem:[#allocation8] sm:$0xff] }
 0x9f1   :  { %1022 = vrot.lane.b32.xlu0 %v1901_v48, %s2253_s7 }
 0x9f2   :  { %1904 = vpow2.f32 %v1798_v52 }
 0x9f6   :  { %v1903_v49 = vpop.eup %1902 }
 0x9f7   :  { %914 = vrot.lane.b32.xlu2 %v1903_v49, %s2253_s7 }
 0x9f8   :  { %v1905_v54 = vpop.eup %1904 }
 0x9f9   :  { %v895_v55 = vadd.f32 1.0, %v1905_v54 }
 0x9fb   :  { %1906 = vrcp.f32 %v895_v55  ;;  %v907_v6 = vand.u32 2147483648, %v895_v55  ;;  %vm901_vm3 = vweird.f32 %v895_v55  ;;  %v905_v8 = vand.u32 2147483647, %v895_v55 }
 0x9fc   :  { %1908 = vpow2.f32 %v1802_v56  ;;  %v2637_v56 = vld [vmem:[#allocation14] sm:$0x1] }
 0x9fd   :  { %v908_v13 = vor.u32 1.1754944e-38, %v907_v6  ;;  %vm906_vm5 = vcmp.eq.f32.partialorder %v905_v8, 8.507059e+37 }
 0xa01   :  { %v1907_v11 = vpop.eup %1906 }
 0xa02   :  { %v897_v57 = vmul.f32 %v1907_v11, %v895_v55  ;;  %v1909_v58 = vpop.eup %1908  ;;  %vm902_vm2 = vweird.f32 %v1907_v11 }
 0xa03   :  { %v1003_v61 = vadd.f32 1.0, %v1909_v58  ;;  %vm903_vm4 = vmor %vm901_vm3, %vm902_vm2 }
 0xa04   :  { %v898_v59 = vsub.f32 1.0, %v897_v57 }
 0xa05   :  { %1910 = vrcp.f32 %v1003_v61  ;;  %v1015_v19 = vand.u32 2147483648, %v1003_v61  ;;  %vm1009_vm7 = vweird.f32 %v1003_v61  ;;  %v1013_v20 = vand.u32 2147483647, %v1003_v61 }
 0xa06   :  { %v899_v62 = vmul.f32 %v1907_v11, %v898_v59 }
 0xa07   :  { %v1016_v23 = vor.u32 1.1754944e-38, %v1015_v19  ;;  %vm1014_vm9 = vcmp.eq.f32.partialorder %v1013_v20, 8.507059e+37 }
 0xa08   :  { %v900_v63 = vadd.f32 %v1907_v11, %v899_v62 }
 0xa0a   :  { %v904_v12 = vsel %vm903_vm4, %v1907_v11, %v900_v63 }
 0xa0b   :  { %v1911_v9 = vpop.eup %1910  ;;  %v909_v15 = vsel %vm906_vm5, %v908_v13, %v904_v12 }
 0xa0c   :  { %v1005_v43 = vmul.f32 %v1911_v9, %v1003_v61  ;;  %vm1010_vm6 = vweird.f32 %v1911_v9  ;;  %v912_v30 = vmul.f32 %v909_v15, %v2548_v21 }
 0xa0d   :  { %vm1011_vm8 = vmor %vm1009_vm7, %vm1010_vm6 }
 0xa0e   :  { %v1006_v47 = vsub.f32 1.0, %v1005_v43 }
 0xa10   :  { %v1007_v17 = vmul.f32 %v1911_v9, %v1006_v47 }
 0xa12   :  { %v1008_v18 = vadd.f32 %v1911_v9, %v1007_v17 }
 0xa14   :  { %v1012_v22 = vsel %vm1011_vm8, %v1911_v9, %v1008_v18 }
 0xa15   :  { %v1017_v26 = vsel %vm1014_vm9, %v1016_v23, %v1012_v22 }
 0xa16   :  { %v1020_v10 = vmul.f32 %v1017_v26, %v2553_v25 }
 0xa51   :  { %v915_v14 = vpop.permute.xlu2 %914 }
 0xa52   :  { %v917_v16 = vmul.f32 %v915_v14, %v909_v15 }
 0xa54   :  { %919 = vrot.lane.b32.xlu1 %v917_v16, %s2254_s1 }
 0xa63   :  { %v1023_v24 = vpop.permute.xlu0 %1022 }
 0xa64   :  { %v1025_v27 = vmul.f32 %v1023_v24, %v1017_v26 }
 0xa66   :  { %1027 = vrot.lane.b32.xlu2 %v1025_v27, %s2254_s1 }
 0xac0   :  { %v1028_v28 = vpop.permute.xlu2 %1027 }
 0xac1   :  { %v2590_v29 = vadd.f32 %v1028_v28, %v1020_v10 }
 0xac3   :  { %1912 = vtanh.f32 %v2590_v29 }
 0xac6   :  { %v920_v31 = vpop.permute.xlu1 %919 }
 0xac7   :  { %v2594_v5 = vadd.f32 %v920_v31, %v912_v30 }
 0xac9   :  { %v1913_v0 = vpop.eup %1912  ;;  %1914 = vtanh.f32 %v2594_v5 }
 0xaca   :  { %1033 = vrot.lane.b32.xlu1 %v1913_v0, %s2253_s7 }
 0xacf   :  { %v1915_v1 = vpop.eup %1914 }
 0xad0   :  { %925 = vrot.lane.b32.xlu0 %v1915_v1, %s2253_s7 }
 0xb3c   :  { %v1034_v4 = vpop.permute.xlu1 %1033 }
 0xb3d   :  { %v1036_v25 = vmul.f32 %v1034_v4, %v1017_v26 }
 0xb3f   :  { %1058 = vrot.lane.b32.xlu0 %v1036_v25, %s2254_s1 }
 0xb42   :  { %v926_v33 = vpop.permute.xlu0 %925 }
 0xb43   :  { %v928_v2 = vmul.f32 %v926_v33, %v909_v15 }
 0xb45   :  { %930 = vrot.lane.b32.xlu2 %v928_v2, %s2254_s1 }
 0xb9f   :  { %v931_v21 = vpop.permute.xlu2 %930 }
 0xba0   :  { %1799 = vmatmul.msk.f32.vlgmr.msra.gmra.mxu3 %vm181_vm1, %v931_v21  ;;  %1803 = vmatmul.msk.f32.vlgmr.msrb.gmra.mxu2 %vm181_vm1, %v931_v21 }
 0xba1   :  { %1350 = vmatpush.msrb.mxu2 %v2603_v7  ;;  %1240 = vmatpush.msra.mxu3 %v2381_v35 }
 0xba3   :  { %1351 = vmatpush.msrb.mxu2 %v2607_v34  ;;  %1241 = vmatpush.msra.mxu3 %v2383_v36  ;;  %v2626_v36 = vld [vmem:[#allocation7 + $0x8] sm:$0xff] }
 0xba5   :  { %1352 = vmatpush.msrb.mxu2 %v2611_v46  ;;  %1242 = vmatpush.msra.mxu3 %v2386_v37  ;;  %v2630_v37 = vld [vmem:[#allocation7] sm:$0xff] }
 0xba7   :  { %1353 = vmatpush.msrb.mxu2 %v2615_v3  ;;  %1243 = vmatpush.msra.mxu3 %v2389_v38 }
 0xba8   :  { %1808 = vmatmul.msk.f32.vlgmr.msra.gmra.mxu2 %vm205_vm0, %v1146_v44 }
 0xba9   :  { %1519 = vmatpush.msra.mxu2 %v2443_v50 }
 0xbab   :  { %1520 = vmatpush.msra.mxu2 %v2445_v32 }
 0xbad   :  { %1521 = vmatpush.msra.mxu2 %v2449_v45 }
 0xbaf   :  { %1522 = vmatpush.msra.mxu2 %v2454_v51 }
 0xbb1   :  { %v1059_v35 = vpop.permute.xlu0 %1058 }
 0xbb2   :  { %1804 = vmatmul.msk.f32.vlgmr.msrb.gmra.mxu3 %vm181_vm1, %v1059_v35  ;;  %1807 = vmatmul.msk.f32.vlgmr.msra.gmra.mxu0 %vm181_vm1, %v1059_v35 }
 0xbb3   :  { %1375 = vmatpush.msrb.mxu3 %v2626_v36  ;;  %1456 = vmatpush.msra.mxu0 %v2392_v39 }
 0xbb5   :  { %1376 = vmatpush.msrb.mxu3 %v2630_v37  ;;  %1457 = vmatpush.msra.mxu0 %v2398_v40 }
 0xbb7   :  { %1458 = vmatpush.msra.mxu0 %v2400_v41 }
 0xbb9   :  { %1459 = vmatpush.msra.mxu0 %v2403_v42 }
 0xc23   :  { %v951_v38 = vpop.f32.mrf.mxu3  ;;  %v1054_v49 = vpop.f32.mrf.mxu2 }
 0xc24   :  { %v952_v48 = vadd.f32 %v951_v38, %v2496_v60 }
 0xc26   :  { %954 = vst [vmem:[#allocation16 + $0x3] sm:$0x1] %v952_v48 }
 0xc2b   :  { %v1187_v52 = vpop.f32.mrf.mxu2 }
 0xc2f   :  { %v1164_v54 = vpop.f32.mrf.mxu0 }
 0xc30   :  { %v1188_v55 = vadd.f32 %v1187_v52, %v1164_v54  ;;  %v1980_v54 = vld [vmem:[#allocation10 + $0x10] sm:$0xff] }
 0xc32   :  { %v1190_v39 = vadd.f32 %v2637_v56, %v1188_v55  ;;  %v1981_v55 = vld [vmem:[#allocation10 + $0x8] sm:$0xff] }
 0xc34   :  { %1916 = vtanh.f32 %v1190_v39  ;;  %v1809_v58 = vmul.f32 -1.442695, %v1190_v39  ;;  %v1982_v39 = vld [vmem:[#allocation10] sm:$0xff] }
 0xc35   :  { %v1079_v11 = vpop.f32.mrf.mxu3 }
 0xc36   :  { %v1080_v57 = vadd.f32 %v1079_v11, %v1054_v49 }
 0xc38   :  { %v1082_v40 = vadd.f32 %v1080_v57, %v2426_v53  ;;  %v2660_v57 = vld [vmem:[#allocation11 + $0x18] sm:$0xff] }
 0xc3a   :  { %v1917_v41 = vpop.eup %1916  ;;  %1918 = vtanh.f32 %v1082_v40  ;;  %v1805_v6 = vmul.f32 -1.442695, %v1082_v40  ;;  %v2664_v40 = vld [vmem:[#allocation11 + $0x10] sm:$0xff] }
 0xc3b   :  { %1213 = vrot.lane.b32.xlu2 %v1917_v41, %s2253_s7  ;;  %1920 = vpow2.f32 %v1809_v58  ;;  %v1337_v41 = vld [vmem:[#allocation2 + $0x6] sm:$0x1]  ;;  %v2672_v58 = vld [vmem:[#allocation11] sm:$0xff] }
 0xc40   :  { %v1919_v42 = vpop.eup %1918 }
 0xc41   :  { %1105 = vrot.lane.b32.xlu1 %v1919_v42, %s2253_s7  ;;  %v1921_v59 = vpop.eup %1920  ;;  %v2668_v42 = vld [vmem:[#allocation11 + $0x8] sm:$0xff] }
 0xc42   :  { %v1194_v61 = vadd.f32 1.0, %v1921_v59 }
 0xc44   :  { %1922 = vrcp.f32 %v1194_v61  ;;  %v1206_v53 = vand.u32 2147483648, %v1194_v61  ;;  %vm1200_vm11 = vweird.f32 %v1194_v61  ;;  %v1204_v43 = vand.u32 2147483647, %v1194_v61 }
 0xc45   :  { %1924 = vpow2.f32 %v1805_v6 }
 0xc46   :  { %v1207_v16 = vor.u32 1.1754944e-38, %v1206_v53  ;;  %vm1205_vm13 = vcmp.eq.f32.partialorder %v1204_v43, 8.507059e+37 }
 0xc4a   :  { %v1923_v62 = vpop.eup %1922 }
 0xc4b   :  { %v1196_v63 = vmul.f32 %v1923_v62, %v1194_v61  ;;  %vm1201_vm10 = vweird.f32 %v1923_v62  ;;  %v1925_v13 = vpop.eup %1924  ;;  %v2685_v61 = vld [vmem:[#allocation14 + $0x1] sm:$0x1] }
 0xc4c   :  { %vm1202_vm12 = vmor %vm1200_vm11, %vm1201_vm10  ;;  %v1086_v15 = vadd.f32 1.0, %v1925_v13 }
 0xc4d   :  { %v1197_v8 = vsub.f32 1.0, %v1196_v63 }
 0xc4e   :  { %1926 = vrcp.f32 %v1086_v15  ;;  %v1098_v26 = vand.u32 2147483648, %v1086_v15  ;;  %vm1092_vm15 = vweird.f32 %v1086_v15  ;;  %v1096_v27 = vand.u32 2147483647, %v1086_v15 }
 0xc4f   :  { %v1198_v9 = vmul.f32 %v1923_v62, %v1197_v8 }
 0xc50   :  { %v1099_v28 = vor.u32 1.1754944e-38, %v1098_v26  ;;  %vm1097_vm3 = vcmp.eq.f32.partialorder %v1096_v27, 8.507059e+37 }
 0xc51   :  { %v1199_v12 = vadd.f32 %v1923_v62, %v1198_v9 }
 0xc53   :  { %v1203_v14 = vsel %vm1202_vm12, %v1923_v62, %v1199_v12 }
 0xc54   :  { %v1208_v17 = vsel %vm1205_vm13, %v1207_v16, %v1203_v14  ;;  %v1927_v19 = vpop.eup %1926 }
 0xc55   :  { %v1088_v20 = vmul.f32 %v1927_v19, %v1086_v15  ;;  %vm1093_vm14 = vweird.f32 %v1927_v19  ;;  %v1211_v1 = vmul.f32 %v1208_v17, %v2590_v29 }
 0xc56   :  { %vm1094_vm2 = vmor %vm1092_vm15, %vm1093_vm14 }
 0xc57   :  { %v1089_v22 = vsub.f32 1.0, %v1088_v20 }
 0xc59   :  { %v1090_v23 = vmul.f32 %v1927_v19, %v1089_v22 }
 0xc5b   :  { %v1091_v24 = vadd.f32 %v1927_v19, %v1090_v23 }
 0xc5d   :  { %v1095_v10 = vsel %vm1094_vm2, %v1927_v19, %v1091_v24 }
 0xc5e   :  { %v1100_v31 = vsel %vm1097_vm3, %v1099_v28, %v1095_v10 }
 0xc5f   :  { %v1103_v2 = vmul.f32 %v1100_v31, %v2594_v5  ;;  %v1979_v5 = vld [vmem:[#allocation10 + $0x18] sm:$0xff] }
 0xc95   :  { %v1214_v47 = vpop.permute.xlu2 %1213 }
 0xc96   :  { %v1216_v18 = vmul.f32 %v1214_v47, %v1208_v17 }
 0xc98   :  { %1218 = vrot.lane.b32.xlu1 %v1216_v18, %s2254_s1 }
 0xcb3   :  { %v1106_v30 = vpop.permute.xlu1 %1105 }
 0xcb4   :  { %v1108_v0 = vmul.f32 %v1106_v30, %v1100_v31 }
 0xcb6   :  { %1110 = vrot.lane.b32.xlu0 %v1108_v0, %s2254_s1 }
 0xd0a   :  { %v1219_v4 = vpop.permute.xlu1 %1218 }
 0xd0b   :  { %v2646_v25 = vadd.f32 %v1219_v4, %v1211_v1 }
 0xd0d   :  { %1928 = vtanh.f32 %v2646_v25 }
 0xd13   :  { %v1929_v33 = vpop.eup %1928 }
 0xd14   :  { %1224 = vrot.lane.b32.xlu0 %v1929_v33, %s2253_s7 }
 0xd28   :  { %v1111_v21 = vpop.permute.xlu0 %1110 }
 0xd29   :  { %v2651_v44 = vadd.f32 %v1111_v21, %v1103_v2 }
 0xd2b   :  { %1930 = vtanh.f32 %v2651_v44 }
 0xd31   :  { %v1931_v35 = vpop.eup %1930 }
 0xd32   :  { %1116 = vrot.lane.b32.xlu2 %v1931_v35, %s2253_s7 }
 0xd86   :  { %v1225_v38 = vpop.permute.xlu0 %1224 }
 0xd87   :  { %v1227_v29 = vmul.f32 %v1225_v38, %v1208_v17 }
 0xd89   :  { %1249 = vrot.lane.b32.xlu2 %v1227_v29, %s2254_s1 }
 0xd8c   :  { %v1117_v48 = vpop.permute.xlu2 %1116 }
 0xd8d   :  { %v1119_v49 = vmul.f32 %v1117_v48, %v1100_v31 }
 0xd8f   :  { %1121 = vrot.lane.b32.xlu1 %v1119_v49, %s2254_s1 }
 0xde3   :  { %v1250_v52 = vpop.permute.xlu2 %1249 }
 0xde4   :  { %1814 = vmatmul.msk.f32.vlgmr.msrb.gmra.mxu2 %vm181_vm1, %v1250_v52 }
 0xde5   :  { %1647 = vmatpush.msrb.mxu2 %v1979_v5 }
 0xde7   :  { %1648 = vmatpush.msrb.mxu2 %v1980_v54 }
 0xde9   :  { %1649 = vmatpush.msrb.mxu2 %v1981_v55 }
 0xdeb   :  { %1650 = vmatpush.msrb.mxu2 %v1982_v39 }
 0xe01   :  { %v1122_v11 = vpop.permute.xlu1 %1121 }
 0xe02   :  { %1806 = vmatmul.msk.f32.vlgmr.msra.gmra.mxu1 %vm181_vm1, %v1122_v11  ;;  %1810 = vmatmul.msk.f32.vlgmr.msra.gmra.mxu3 %vm181_vm1, %v1122_v11  ;;  %v1528_v11 = vld [vmem:[#allocation2 + $0x7] sm:$0x1] }
 0xe03   :  { %1431 = vmatpush.msra.mxu1 %v2660_v57  ;;  %1541 = vmatpush.msra.mxu3 %v2603_v7 }
 0xe05   :  { %1432 = vmatpush.msra.mxu1 %v2664_v40  ;;  %1542 = vmatpush.msra.mxu3 %v2607_v34 }
 0xe07   :  { %1433 = vmatpush.msra.mxu1 %v2668_v42  ;;  %1543 = vmatpush.msra.mxu3 %v2611_v46 }
 0xe09   :  { %1434 = vmatpush.msra.mxu1 %v2672_v58  ;;  %1544 = vmatpush.msra.mxu3 %v2615_v3 }
 0xe0a   :  { %1811 = vmatmul.msk.f32.vlgmr.msrb.gmra.mxu1 %vm181_vm1, %v1250_v52  ;;  %1815 = vmatmul.msk.f32.vlgmr.msrb.gmra.mxu3 %vm205_vm0, %v1337_v41 }
 0xe0b   :  { %1566 = vmatpush.msrb.mxu1 %v2626_v36  ;;  %1710 = vmatpush.msrb.mxu3 %v2443_v50 }
 0xe0d   :  { %1567 = vmatpush.msrb.mxu1 %v2630_v37  ;;  %1711 = vmatpush.msrb.mxu3 %v2445_v32 }
 0xe0f   :  { %1712 = vmatpush.msrb.mxu3 %v2449_v45 }
 0xe11   :  { %1713 = vmatpush.msrb.mxu3 %v2454_v51 }
 0xe67   :  { %v1355_v50 = vpop.f32.mrf.mxu2 }
 0xe7f   :  { %v1142_v7 = vpop.f32.mrf.mxu1 }
 0xe80   :  { %v1143_v34 = vadd.f32 %v1142_v7, %v2496_v60  ;;  %v2714_v7 = vld [vmem:[#allocation14 + $0x2] sm:$0x1] }
 0xe82   :  { %1145 = vst [vmem:[#allocation16 + $0x4] sm:$0x1] %v1143_v34 }
 0xe85   :  { %v1245_v46 = vpop.f32.mrf.mxu3 }
 0xe87   :  { %v1270_v3 = vpop.f32.mrf.mxu1 }
 0xe88   :  { %v1271_v59 = vadd.f32 %v1270_v3, %v1245_v46 }
 0xe8a   :  { %v1273_v36 = vadd.f32 %v2685_v61, %v1271_v59 }
 0xe8c   :  { %1932 = vtanh.f32 %v1273_v36  ;;  %v1812_v60 = vmul.f32 -1.442695, %v1273_v36 }
 0xe8d   :  { %v1378_v37 = vpop.f32.mrf.mxu3 }
 0xe8e   :  { %v1379_v62 = vadd.f32 %v1378_v37, %v1355_v50 }
 0xe90   :  { %v1381_v32 = vadd.f32 %v2637_v56, %v1379_v62 }
 0xe92   :  { %v1933_v45 = vpop.eup %1932  ;;  %1934 = vtanh.f32 %v1381_v32  ;;  %v1816_v63 = vmul.f32 -1.442695, %v1381_v32 }
 0xe93   :  { %1296 = vrot.lane.b32.xlu0 %v1933_v45, %s2253_s7  ;;  %1936 = vpow2.f32 %v1812_v60 }
 0xe94   :  { %1938 = vpow2.f32 %v1816_v63 }
 0xe98   :  { %v1935_v51 = vpop.eup %1934 }
 0xe99   :  { %1404 = vrot.lane.b32.xlu1 %v1935_v51, %s2253_s7  ;;  %v1937_v6 = vpop.eup %1936 }
 0xe9a   :  { %v1277_v8 = vadd.f32 1.0, %v1937_v6  ;;  %v1939_v9 = vpop.eup %1938 }
 0xe9b   :  { %v1385_v12 = vadd.f32 1.0, %v1939_v9 }
 0xe9c   :  { %1940 = vrcp.f32 %v1277_v8  ;;  %v1289_v18 = vand.u32 2147483648, %v1277_v8  ;;  %vm1283_vm5 = vweird.f32 %v1277_v8  ;;  %v1287_v19 = vand.u32 2147483647, %v1277_v8 }
 0xe9d   :  { %1942 = vrcp.f32 %v1385_v12  ;;  %v1397_v10 = vand.u32 2147483648, %v1385_v12  ;;  %vm1391_vm9 = vweird.f32 %v1385_v12  ;;  %v1395_v30 = vand.u32 2147483647, %v1385_v12 }
 0xe9e   :  { %v1290_v23 = vor.u32 1.1754944e-38, %v1289_v18  ;;  %vm1288_vm7 = vcmp.eq.f32.partialorder %v1287_v19, 8.507059e+37 }
 0xe9f   :  { %v1398_v0 = vor.u32 1.1754944e-38, %v1397_v10  ;;  %vm1396_vm11 = vcmp.eq.f32.partialorder %v1395_v30, 8.507059e+37 }
 0xea2   :  { %v1941_v53 = vpop.eup %1940 }
 0xea3   :  { %v1279_v13 = vmul.f32 %v1941_v53, %v1277_v8  ;;  %v1943_v43 = vpop.eup %1942  ;;  %vm1284_vm4 = vweird.f32 %v1941_v53 }
 0xea4   :  { %v1387_v15 = vmul.f32 %v1943_v43, %v1385_v12  ;;  %vm1285_vm6 = vmor %vm1283_vm5, %vm1284_vm4  ;;  %vm1392_vm8 = vweird.f32 %v1943_v43  ;;  %vm1720_vm5 = vcmask 253952  }
 0xea5   :  { %v1280_v14 = vsub.f32 1.0, %v1279_v13  ;;  %vm1393_vm10 = vmor %vm1391_vm9, %vm1392_vm8 }
 0xea6   :  { %v1388_v47 = vsub.f32 1.0, %v1387_v15 }
 0xea7   :  { %v1281_v16 = vmul.f32 %v1941_v53, %v1280_v14 }
 0xea8   :  { %v1389_v20 = vmul.f32 %v1943_v43, %v1388_v47 }
 0xea9   :  { %v1282_v17 = vadd.f32 %v1941_v53, %v1281_v16 }
 0xeaa   :  { %v1390_v24 = vadd.f32 %v1943_v43, %v1389_v20 }
 0xeab   :  { %v1286_v22 = vsel %vm1285_vm6, %v1941_v53, %v1282_v17  ;;  %vm1722_vm6 = vcmask 516352  }
 0xeac   :  { %v1291_v27 = vsel %vm1288_vm7, %v1290_v23, %v1286_v22  ;;  %v1394_v31 = vsel %vm1393_vm10, %v1943_v43, %v1390_v24 }
 0xead   :  { %v1399_v4 = vsel %vm1396_vm11, %v1398_v0, %v1394_v31  ;;  %v1294_v2 = vmul.f32 %v1291_v27, %v2651_v44  ;;  %vm1727_vm11 = vcmask 778752  }
 0xeae   :  { %v1402_v29 = vmul.f32 %v1399_v4, %v2646_v25 }
 0xf05   :  { %v1297_v26 = vpop.permute.xlu0 %1296 }
 0xf06   :  { %v1299_v28 = vmul.f32 %v1297_v26, %v1291_v27 }
 0xf08   :  { %1301 = vrot.lane.b32.xlu2 %v1299_v28, %s2254_s1 }
 0xf0b   :  { %v1405_v1 = vpop.permute.xlu1 %1404 }
 0xf0c   :  { %v1407_v33 = vmul.f32 %v1405_v1, %v1399_v4 }
 0xf0e   :  { %1409 = vrot.lane.b32.xlu0 %v1407_v33, %s2254_s1 }
 0xf62   :  { %v1302_v21 = vpop.permute.xlu2 %1301 }
 0xf63   :  { %v2694_v35 = vadd.f32 %v1302_v21, %v1294_v2 }
 0xf65   :  { %1944 = vtanh.f32 %v2694_v35 }
 0xf6b   :  { %v1945_v38 = vpop.eup %1944 }
 0xf6c   :  { %1307 = vrot.lane.b32.xlu1 %v1945_v38, %s2253_s7 }
 0xf80   :  { %v1410_v48 = vpop.permute.xlu0 %1409 }
 0xf81   :  { %v2699_v49 = vadd.f32 %v1410_v48, %v1402_v29 }
 0xf83   :  { %1946 = vtanh.f32 %v2699_v49 }
 0xf89   :  { %v1947_v52 = vpop.eup %1946 }
 0xf8a   :  { %1415 = vrot.lane.b32.xlu2 %v1947_v52, %s2253_s7 }
 0xfde   :  { %v1308_v5 = vpop.permute.xlu1 %1307 }
 0xfdf   :  { %v1310_v44 = vmul.f32 %v1308_v5, %v1291_v27 }
 0xfe1   :  { %1312 = vrot.lane.b32.xlu0 %v1310_v44, %s2254_s1 }
 0xfe4   :  { %v1416_v54 = vpop.permute.xlu2 %1415 }
 0xfe5   :  { %v1418_v55 = vmul.f32 %v1416_v54, %v1399_v4 }
 0xfe7   :  { %1440 = vrot.lane.b32.xlu1 %v1418_v55, %s2254_s1 }
0x1053   :  { %v1313_v39 = vpop.permute.xlu0 %1312 }
0x1054   :  { %1813 = vmatmul.msk.f32.vlgmr.msrb.gmra.mxu0 %vm181_vm1, %v1313_v39  ;;  %1817 = vmatmul.msk.f32.vlgmr.msra.gmra.mxu1 %vm181_vm1, %v1313_v39 }
0x1055   :  { %1622 = vmatpush.msrb.mxu0 %v2660_v57 }
0x1057   :  { %1623 = vmatpush.msrb.mxu0 %v2664_v40 }
0x1059   :  { %v1441_v25 = vpop.permute.xlu1 %1440  ;;  %1624 = vmatpush.msrb.mxu0 %v2668_v42 }
0x105a   :  { %1821 = vmatmul.msk.f32.vlgmr.msra.gmra.mxu3 %vm181_vm1, %v1441_v25 }
0x105b   :  { %1625 = vmatpush.msrb.mxu0 %v2672_v58 }
0x105c   :  { %1818 = vmatmul.msk.f32.vlgmr.msra.gmra.mxu0 %vm181_vm1, %v1441_v25  ;;  %1822 = vmatmul.msk.f32.vlgmr.msrb.gmra.mxu1 %vm205_vm0, %v1528_v11 }
0x10d1   :  { %v1333_v41 = vpop.f32.mrf.mxu0  ;;  %v1436_v57 = vpop.f32.mrf.mxu1 }
0x10d2   :  { %v1334_v34 = vadd.f32 %v2714_v7, %v1333_v41 }
0x10d4   :  { %1336 = vst [vmem:[#allocation16 + $0x5] sm:$0x1] %v1334_v34 }
0x10d9   :  { %v1461_v40 = vpop.f32.mrf.mxu0  ;;  %v1569_v3 = vpop.f32.mrf.mxu1 }
0x10da   :  { %v1462_v46 = vadd.f32 %v1461_v40, %v1436_v57 }
0x10dc   :  { %v1464_v42 = vadd.f32 %v2685_v61, %v1462_v46 }
0x10dd   :  { %v1546_v59 = vpop.f32.mrf.mxu3 }
0x10de   :  { %1948 = vtanh.f32 %v1464_v42  ;;  %v1570_v36 = vadd.f32 %v1569_v3, %v1546_v59  ;;  %v1819_v62 = vmul.f32 -1.442695, %v1464_v42 }
0x10e0   :  { %v1572_v58 = vadd.f32 %v2637_v56, %v1570_v36 }
0x10e2   :  { %1950 = vtanh.f32 %v1572_v58  ;;  %v1823_v63 = vmul.f32 -1.442695, %v1572_v58 }
0x10e3   :  { %1952 = vpow2.f32 %v1819_v62 }
0x10e4   :  { %v1949_v50 = vpop.eup %1948 }
0x10e5   :  { %1487 = vrot.lane.b32.xlu2 %v1949_v50, %s2253_s7 }
0x10e8   :  { %v1951_v37 = vpop.eup %1950 }
0x10e9   :  { %1595 = vrot.lane.b32.xlu0 %v1951_v37, %s2253_s7  ;;  %v1953_v32 = vpop.eup %1952 }
0x10ea   :  { %v1468_v45 = vadd.f32 1.0, %v1953_v32 }
0x10ec   :  { %1954 = vrcp.f32 %v1468_v45  ;;  %v1480_v12 = vand.u32 2147483648, %v1468_v45  ;;  %vm1474_vm12 = vweird.f32 %v1468_v45  ;;  %v1478_v53 = vand.u32 2147483647, %v1468_v45 }
0x10ed   :  { %1956 = vpow2.f32 %v1823_v63 }
0x10ee   :  { %v1481_v14 = vor.u32 1.1754944e-38, %v1480_v12  ;;  %vm1479_vm14 = vcmp.eq.f32.partialorder %v1478_v53, 8.507059e+37 }
0x10f2   :  { %v1955_v51 = vpop.eup %1954 }
0x10f3   :  { %v1470_v60 = vmul.f32 %v1955_v51, %v1468_v45  ;;  %v1957_v9 = vpop.eup %1956  ;;  %vm1475_vm0 = vweird.f32 %v1955_v51 }
0x10f4   :  { %v1576_v13 = vadd.f32 1.0, %v1957_v9  ;;  %vm1476_vm13 = vmor %vm1474_vm12, %vm1475_vm0  ;;  %vm1733_vm0 = vcmask 1041152  }
0x10f5   :  { %v1471_v6 = vsub.f32 1.0, %v1470_v60 }
0x10f6   :  { %1958 = vrcp.f32 %v1576_v13  ;;  %v1588_v23 = vand.u32 2147483648, %v1576_v13  ;;  %vm1582_vm2 = vweird.f32 %v1576_v13  ;;  %v1586_v24 = vand.u32 2147483647, %v1576_v13 }
0x10f7   :  { %v1472_v8 = vmul.f32 %v1955_v51, %v1471_v6 }
0x10f8   :  { %v1589_v27 = vor.u32 1.1754944e-38, %v1588_v23  ;;  %vm1587_vm4 = vcmp.eq.f32.partialorder %v1586_v24, 8.507059e+37 }
0x10f9   :  { %v1473_v56 = vadd.f32 %v1955_v51, %v1472_v8 }
0x10fb   :  { %v1477_v43 = vsel %vm1476_vm13, %v1955_v51, %v1473_v56 }
0x10fc   :  { %v1482_v16 = vsel %vm1479_vm14, %v1481_v14, %v1477_v43  ;;  %v1959_v17 = vpop.eup %1958 }
0x10fd   :  { %v1578_v18 = vmul.f32 %v1959_v17, %v1576_v13  ;;  %vm1583_vm15 = vweird.f32 %v1959_v17  ;;  %v1485_v31 = vmul.f32 %v1482_v16, %v2694_v35 }
0x10fe   :  { %vm1584_vm3 = vmor %vm1582_vm2, %vm1583_vm15 }
0x10ff   :  { %v1579_v19 = vsub.f32 1.0, %v1578_v18 }
0x1101   :  { %v1580_v20 = vmul.f32 %v1959_v17, %v1579_v19 }
0x1103   :  { %v1581_v22 = vadd.f32 %v1959_v17, %v1580_v20 }
0x1105   :  { %v1585_v26 = vsel %vm1584_vm3, %v1959_v17, %v1581_v22 }
0x1106   :  { %v1590_v28 = vsel %vm1587_vm4, %v1589_v27, %v1585_v26 }
0x1107   :  { %v1593_v4 = vmul.f32 %v1590_v28, %v2699_v49 }
0x113f   :  { %v1488_v15 = vpop.permute.xlu2 %1487 }
0x1140   :  { %v1490_v47 = vmul.f32 %v1488_v15, %v1482_v16 }
0x1142   :  { %1492 = vrot.lane.b32.xlu1 %v1490_v47, %s2254_s1 }
0x115b   :  { %v1596_v10 = vpop.permute.xlu0 %1595 }
0x115c   :  { %v1598_v30 = vmul.f32 %v1596_v10, %v1590_v28 }
0x115e   :  { %1600 = vrot.lane.b32.xlu2 %v1598_v30, %s2254_s1 }
0x11b4   :  { %v1493_v0 = vpop.permute.xlu1 %1492 }
0x11b5   :  { %v1495_v1 = vadd.f32 %v1493_v0, %v1485_v31 }
0x11b7   :  { %1960 = vtanh.f32 %v1495_v1 }
0x11b8   :  { %v1601_v33 = vpop.permute.xlu2 %1600 }
0x11b9   :  { %v1603_v2 = vadd.f32 %v1601_v33, %v1593_v4 }
0x11bb   :  { %1962 = vtanh.f32 %v1603_v2 }
0x11bd   :  { %v1961_v21 = vpop.eup %1960 }
0x11be   :  { %1498 = vrot.lane.b32.xlu0 %v1961_v21, %s2253_s7 }
0x11c1   :  { %v1963_v38 = vpop.eup %1962 }
0x11c2   :  { %1606 = vrot.lane.b32.xlu1 %v1963_v38, %s2253_s7 }
0x1230   :  { %v1499_v29 = vpop.permute.xlu0 %1498 }
0x1231   :  { %v1501_v48 = vmul.f32 %v1499_v29, %v1482_v16 }
0x1233   :  { %1503 = vrot.lane.b32.xlu2 %v1501_v48, %s2254_s1 }
0x1234   :  { %v1607_v52 = vpop.permute.xlu1 %1606 }
0x1235   :  { %v1609_v35 = vmul.f32 %v1607_v52, %v1590_v28 }
0x1237   :  { %1631 = vrot.lane.b32.xlu0 %v1609_v35, %s2254_s1 }
0x128d   :  { %v1504_v5 = vpop.permute.xlu2 %1503 }
0x128e   :  { %1820 = vmatmul.msk.f32.vlgmr.msra.gmra.mxu2 %vm181_vm1, %v1504_v5  ;;  %1824 = vmatmul.msk.f32.vlgmr.msrb.gmra.mxu0 %vm181_vm1, %v1504_v5 }
0x12a9   :  { %v1632_v49 = vpop.permute.xlu0 %1631 }
0x12aa   :  { %1721 = vst.msk [vmem:[#allocation17] sm:$0x1] %vm1720_vm5, %v1632_v49  ;;  %1825 = vmatmul.msk.f32.vlgmr.msrb.gmra.mxu2 %vm181_vm1, %v1632_v49 }
0x12ab   :  { %1723 = vst.msk [vmem:[#allocation17] sm:$0x1] %vm1722_vm6, %v1603_v2 }
0x130b   :  { %v1627_v55 = vpop.f32.mrf.mxu0 }
0x1311   :  { %v1524_v44 = vpop.f32.mrf.mxu2 }
0x1312   :  { %v1525_v54 = vadd.f32 %v2714_v7, %v1524_v44 }
0x1314   :  { %1527 = vst [vmem:[#allocation16 + $0x6] sm:$0x1] %v1525_v54 }
0x132d   :  { %v1652_v39 = vpop.f32.mrf.mxu2 }
0x132e   :  { %v1653_v25 = vadd.f32 %v1652_v39, %v1627_v55 }
0x1330   :  { %v1655_v11 = vadd.f32 %v2685_v61, %v1653_v25 }
0x1332   :  { %1964 = vtanh.f32 %v1655_v11  ;;  %v1826_v34 = vmul.f32 -1.442695, %v1655_v11 }
0x1334   :  { %1966 = vpow2.f32 %v1826_v34 }
0x1338   :  { %v1965_v41 = vpop.eup %1964 }
0x1339   :  { %1678 = vrot.lane.b32.xlu1 %v1965_v41, %s2253_s7 }
0x133a   :  { %v1967_v57 = vpop.eup %1966 }
0x133b   :  { %v1659_v40 = vadd.f32 1.0, %v1967_v57 }
0x133d   :  { %1968 = vrcp.f32 %v1659_v40  ;;  %v1671_v58 = vand.u32 2147483648, %v1659_v40  ;;  %vm1665_vm8 = vweird.f32 %v1659_v40  ;;  %v1669_v50 = vand.u32 2147483647, %v1659_v40 }
0x133f   :  { %v1672_v37 = vor.u32 1.1754944e-38, %v1671_v58  ;;  %vm1670_vm10 = vcmp.eq.f32.partialorder %v1669_v50, 8.507059e+37 }
0x1343   :  { %v1969_v46 = vpop.eup %1968 }
0x1344   :  { %v1661_v3 = vmul.f32 %v1969_v46, %v1659_v40  ;;  %vm1666_vm7 = vweird.f32 %v1969_v46 }
0x1345   :  { %vm1667_vm9 = vmor %vm1665_vm8, %vm1666_vm7 }
0x1346   :  { %v1662_v42 = vsub.f32 1.0, %v1661_v3 }
0x1348   :  { %v1663_v59 = vmul.f32 %v1969_v46, %v1662_v42 }
0x134a   :  { %v1664_v36 = vadd.f32 %v1969_v46, %v1663_v59 }
0x134c   :  { %v1668_v61 = vsel %vm1667_vm9, %v1969_v46, %v1664_v36 }
0x134d   :  { %v1673_v32 = vsel %vm1670_vm10, %v1672_v37, %v1668_v61 }
0x134e   :  { %v1676_v51 = vmul.f32 %v1673_v32, %v1495_v1 }
0x13ab   :  { %v1679_v62 = vpop.permute.xlu1 %1678 }
0x13ac   :  { %v1681_v45 = vmul.f32 %v1679_v62, %v1673_v32 }
0x13ae   :  { %1683 = vrot.lane.b32.xlu2 %v1681_v45, %s2254_s1 }
0x1408   :  { %v1684_v60 = vpop.permute.xlu2 %1683 }
0x1409   :  { %v1686_v63 = vadd.f32 %v1684_v60, %v1676_v51 }
0x140b   :  { %1970 = vtanh.f32 %v1686_v63 }
0x1411   :  { %v1971_v6 = vpop.eup %1970 }
0x1412   :  { %1689 = vrot.lane.b32.xlu0 %v1971_v6, %s2253_s7 }
0x141a   :  { %1730 = vrot.lane.b32.xlu0 %v1686_v63, %s2253_s7 }
0x1484   :  { %v1690_v8 = vpop.permute.xlu0 %1689 }
0x1485   :  { %v1692_v9 = vmul.f32 %v1690_v8, %v1673_v32 }
0x1487   :  { %1724 = vrot.lane.b32.xlu2 %v1692_v9, %s2255_s22  ;;  %1694 = vrot.lane.b32.xlu1 %v1692_v9, %s2254_s1 }
0x148c   :  { %v1731_v12 = vpop.permute.xlu0 %1730 }
0x14e1   :  { %v1725_v56 = vpop.permute.xlu2 %1724 }
0x14e2   :  { %1728 = vst.msk [vmem:[#allocation17] sm:$0x1] %vm1727_vm11, %v1725_v56 }
0x14e3   :  { %1734 = vst.msk [vmem:[#allocation17] sm:$0x1] %vm1733_vm0, %v1731_v12 }
0x14e4   :  { %1756 = dma.vmem_to_hbm [thread:$0]  %s1752_s25, 16, %s1754_s5, [#allocation18]  }
0x14f9   :  { %v1695_v53 = vpop.permute.xlu1 %1694 }
0x14fa   :  { %1827 = vmatmul.msk.f32.vlgmr.msrb.gmra.mxu3 %vm181_vm1, %v1695_v53 }
0x157d   :  { %v1715_v13 = vpop.f32.mrf.mxu3 }
0x157e   :  { %v1716_v43 = vadd.f32 %v2714_v7, %v1715_v13 }
0x1580   :  { %1718 = vst [vmem:[#allocation16 + $0x7] sm:$0x1] %v1716_v43 }
0x1581   :  { %1745 = dma.vmem_to_hbm [thread:$0]  %s1741_s28, 128, %s1743_s10, [#allocation4]  }
0x1582   :  { %2239 = dma.done.wait [#allocation4], 128  }
0x1583   :  { %2240 = vsyncadd [#allocation4], 4294967168 }
0x1584   :  { %2241 = dma.done.wait [#allocation18], 16  }
0x1585   :  { %2242 = vsyncadd [#allocation18], 4294967280 }
0x1586   :  { %1765 = vsyncpa [#allocation3], 1 }
0x1587   :  { %1766 = vsyncpa [#allocation6], 1 }
0x1588   :  { %1767 = vsyncpa [#allocation9], 1 }
0x1589   :  { %1768 = vsyncpa [#allocation12], 1 }
0x158a   :  { %1769 = vsyncpa [#allocation15], 1 }
0x158b   :  { %1770 = vsyncpa [#allocation4], 1 }
0x158c   :  { %1771 = vsyncpa [#allocation18], 1 }

</bundles_post_ra>
